<compile_context>
chip_gen: v6e
topology: v6e:2x2x1
jax: 0.10.0
libtpu: 0.0.40
codegen_flags: <defaults>
</compile_context>

<pallas_src>
import functools

import numpy as np
import jax
import jax.numpy as jnp
from jax.experimental import pallas as pl
from jax.experimental.pallas import tpu as pltpu


# ----------------------------- hparams (small) ------------------------------
class HParams:
    num_mels = 16
    sample_rate = 16000
    fmin = 0.0
    fmax = 8000.0
    n_fft = 256
    hop_size = 64
    win_size = 256
    n_stft = n_fft // 2 + 1          # 129
    min_level_db = -100.0
    ref_level_db = 20.0
    max_abs_value = 4.0


hparams = HParams()
TOP_DB = -hparams.min_level_db                              # 100.0
MIN_LEVEL = float(np.exp(TOP_DB / -20.0 * np.log(10.0)))    # 1e-5
MAX_ABS = float(hparams.max_abs_value)

# Lane-aligned padded sizes and frame-axis tile.
N_STFT_PAD = 256       # 129 -> 256 (zero-padded bins)
N_MELS_PAD = 128       # 16  -> 128 (zero-padded mel channels)
TILE_T = 256           # frames per grid step (multiple of 8, MXU friendly)

# Fused amp->dB + normalization:
#   db   = 20*log10(clamp(mel, MIN_LEVEL)) - ref_level_db
#   norm = 2*max_abs*((db + TOP_DB)/TOP_DB) - max_abs
# collapses to: norm = LOG_A * ln(clamp(mel, MIN_LEVEL)) + LOG_B, then clip.
LOG_A = 2.0 * MAX_ABS * 20.0 / (TOP_DB * float(np.log(10.0)))
LOG_B = MAX_ABS - 2.0 * MAX_ABS * hparams.ref_level_db / TOP_DB


# --------------------------- deterministic params ---------------------------
def melscale_fbanks_slaney_htk(n_freqs, f_min, f_max, n_mels, sample_rate):
    """torchaudio.functional.melscale_fbanks(mel_scale='htk', norm='slaney')."""
    all_freqs = np.linspace(0.0, sample_rate // 2, n_freqs)

    def hz_to_mel(f):
        return 2595.0 * np.log10(1.0 + f / 700.0)

    def mel_to_hz(m):
        return 700.0 * (10.0 ** (m / 2595.0) - 1.0)

    m_min, m_max = hz_to_mel(f_min), hz_to_mel(f_max)
    m_pts = np.linspace(m_min, m_max, n_mels + 2)
    f_pts = mel_to_hz(m_pts)
    f_diff = f_pts[1:] - f_pts[:-1]                        # (n_mels+1,)
    slopes = f_pts[None, :] - all_freqs[:, None]           # (n_freqs, n_mels+2)
    down_slopes = -slopes[:, :-2] / f_diff[:-1]
    up_slopes = slopes[:, 2:] / f_diff[1:]
    fb = np.maximum(0.0, np.minimum(down_slopes, up_slopes))
    enorm = 2.0 / (f_pts[2:n_mels + 2] - f_pts[:n_mels])   # slaney norm
    fb = fb * enorm[None, :]
    return fb.astype(np.float32)


def windowed_dft_matrices(n_fft, n_stft):
    """Hann(periodic)-windowed real/imag DFT basis: (n_fft, n_stft)."""
    n = np.arange(n_fft)
    k = np.arange(n_stft)
    win = 0.5 * (1.0 - np.cos(2.0 * np.pi * n / n_fft))    # torch.hann_window
    ang = 2.0 * np.pi * np.outer(n, k) / n_fft
    cos_mat = (win[:, None] * np.cos(ang)).astype(np.float32)
    sin_mat = (-win[:, None] * np.sin(ang)).astype(np.float32)
    return cos_mat, sin_mat


@functools.lru_cache(maxsize=1)
def _constants():
    """Build (once) the lane-padded DFT / mel-filterbank constants on device."""
    cos_np, sin_np = windowed_dft_matrices(hparams.n_fft, hparams.n_stft)
    fb_np = melscale_fbanks_slaney_htk(
        hparams.n_stft, hparams.fmin, hparams.fmax,
        hparams.num_mels, hparams.sample_rate)

    # Zero-pad to lane-aligned shapes. Padded spectrum bins are exactly zero
    # (zero DFT columns) and padded filterbank rows/cols are zero, so the
    # result for the first 16 mel channels is unchanged.
    cos_pad = np.zeros((hparams.n_fft, N_STFT_PAD), np.float32)
    sin_pad = np.zeros((hparams.n_fft, N_STFT_PAD), np.float32)
    fb_pad = np.zeros((N_STFT_PAD, N_MELS_PAD), np.float32)
    cos_pad[:, :hparams.n_stft] = cos_np
    sin_pad[:, :hparams.n_stft] = sin_np
    fb_pad[:hparams.n_stft, :hparams.num_mels] = fb_np

    return jnp.asarray(cos_pad), jnp.asarray(sin_pad), jnp.asarray(fb_pad)


# -------------------------------- Pallas kernel ------------------------------
def _audio_mel_kernel(frames_ref, cos_ref, sin_ref, fb_ref, out_ref):
    frames = frames_ref[...]                                  # (TILE_T, n_fft)
    # STFT via two MXU matmuls (real / imaginary), then magnitude (power=1,
    # matching torch.abs(spec) in the reference).
    re = jnp.dot(frames, cos_ref[...], preferred_element_type=jnp.float32)
    im = jnp.dot(frames, sin_ref[...], preferred_element_type=jnp.float32)
    mag = jnp.sqrt(re * re + im * im)                         # (TILE_T, 256)
    # MelScale: mag @ fb -> (TILE_T, 128)
    mel = jnp.dot(mag, fb_ref[...], preferred_element_type=jnp.float32)
    # Fused amp->dB + normalize + clip (single FMA after the EUP log).
    norm = LOG_A * jnp.log(jnp.maximum(mel, MIN_LEVEL)) + LOG_B
    out_ref[...] = jnp.clip(norm, -MAX_ABS, MAX_ABS)


@jax.jit
def _audio_loader_jit(waveform, cos_mat, sin_mat, fb):
    n_fft = hparams.n_fft
    hop = hparams.hop_size

    # torch.stft(center=True, pad_mode='reflect') framing (glue, fused by jit).
    padded = jnp.pad(waveform, (n_fft // 2, n_fft // 2), mode="reflect")
    n_frames = 1 + (padded.shape[0] - n_fft) // hop
    idx = jnp.arange(n_frames)[:, None] * hop + jnp.arange(n_fft)[None, :]
    frames = padded[idx].astype(jnp.float32)                  # (T, n_fft)

    # Pad the time axis to a multiple of TILE_T (padded rows -> silence).
    num_tiles = pl.cdiv(n_frames, TILE_T)
    t_pad = num_tiles * TILE_T
    frames = jnp.pad(frames, ((0, t_pad - n_frames), (0, 0)))

    out = pl.pallas_call(
        _audio_mel_kernel,
        out_shape=jax.ShapeDtypeStruct((t_pad, N_MELS_PAD), jnp.float32),
        grid=(num_tiles,),
        in_specs=[
            pl.BlockSpec((TILE_T, n_fft), lambda i: (i, 0)),       # frames tile
            pl.BlockSpec((n_fft, N_STFT_PAD), lambda i: (0, 0)),   # cos (const)
            pl.BlockSpec((n_fft, N_STFT_PAD), lambda i: (0, 0)),   # sin (const)
            pl.BlockSpec((N_STFT_PAD, N_MELS_PAD), lambda i: (0, 0)),  # fb
        ],
        out_specs=pl.BlockSpec((TILE_T, N_MELS_PAD), lambda i: (i, 0)),
        compiler_params=pltpu.CompilerParams(
            dimension_semantics=("parallel",)),
    )(frames, cos_mat, sin_mat, fb)                           # (t_pad, 128)

    # Slice back to the real mel channels / frames, then to PyTorch layout.
    mel = out[:n_frames, :hparams.num_mels]                   # (T, n_mels)
    return jnp.transpose(mel)[None, :, :]                     # (1, n_mels, T)


def audio_loader_forward(waveform):
    """Equivalent of AudioLoader.forward, taking a 1-D waveform array."""
    cos_mat, sin_mat, fb = _constants()
    return _audio_loader_jit(waveform, cos_mat, sin_mat, fb)


# ------------------------------------ main -----------------------------------
if __name__ == "__main__":
    key = jax.random.PRNGKey(0)
    n_samples = 2048                       # small synthetic "audio clip"
    waveform = 0.1 * jax.random.normal(key, (n_samples,), dtype=jnp.float32)

    mels = audio_loader_forward(waveform)
    mels = jax.block_until_ready(mels)

    expected_frames = 1 + n_samples // hparams.hop_size   # n_fft % hop == 0
    assert mels.shape == (1, hparams.num_mels, expected_frames), mels.shape
    assert bool(jnp.all(jnp.isfinite(mels)))
    assert bool(jnp.all(jnp.abs(mels) <= hparams.max_abs_value + 1e-5))

    print("KERNEL_OK")
</pallas_src>

<mosaic_0001>
module attributes {stable_mosaic.version = 11 : i64} {
  func.func @_audio_mel_kernel(%arg0: i32, %arg1: memref<256x256xf32, #tpu.memory_space<vmem>>, %arg2: memref<256x256xf32, #tpu.memory_space<vmem>>, %arg3: memref<256x256xf32, #tpu.memory_space<vmem>>, %arg4: memref<256x128xf32, #tpu.memory_space<vmem>>, %arg5: memref<256x128xf32, #tpu.memory_space<vmem>>) attributes {dimension_semantics = [#tpu.dimension_semantics<parallel>], iteration_bounds = array<i64: 1>, scalar_prefetch = 0 : i64, scratch_operands = 0 : i64, tpu.core_type = #tpu.core_type<tc>, window_params = [{transform_indices = @transform_0, window_bounds = array<i64: 256, 256>}, {pipeline_mode = #tpu.pipeline_mode<synchronous>, transform_indices = @transform_1, window_bounds = array<i64: 256, 256>}, {pipeline_mode = #tpu.pipeline_mode<synchronous>, transform_indices = @transform_2, window_bounds = array<i64: 256, 256>}, {pipeline_mode = #tpu.pipeline_mode<synchronous>, transform_indices = @transform_3, window_bounds = array<i64: 256, 128>}, {transform_indices = @transform_4, window_bounds = array<i64: 256, 128>}]} {
    %c0 = arith.constant 0 : index
    %c0_0 = arith.constant 0 : index
    %0 = vector.load %arg1[%c0, %c0_0] : memref<256x256xf32, #tpu.memory_space<vmem>>, vector<256x256xf32>
    %c0_1 = arith.constant 0 : index
    %c0_2 = arith.constant 0 : index
    %1 = vector.load %arg2[%c0_1, %c0_2] : memref<256x256xf32, #tpu.memory_space<vmem>>, vector<256x256xf32>
    %cst = arith.constant dense<0.000000e+00> : vector<256x256xf32>
    %2 = tpu.matmul %0, %1, %cst {dimension_numbers = #tpu.dot_dimension_numbers<[1], [0], [0], [1], [0, 0, 1, 1], [], []>} : vector<256x256xf32>, vector<256x256xf32>, vector<256x256xf32> -> vector<256x256xf32>
    %c0_3 = arith.constant 0 : index
    %c0_4 = arith.constant 0 : index
    %3 = vector.load %arg3[%c0_3, %c0_4] : memref<256x256xf32, #tpu.memory_space<vmem>>, vector<256x256xf32>
    %cst_5 = arith.constant dense<0.000000e+00> : vector<256x256xf32>
    %4 = tpu.matmul %0, %3, %cst_5 {dimension_numbers = #tpu.dot_dimension_numbers<[1], [0], [0], [1], [0, 0, 1, 1], [], []>} : vector<256x256xf32>, vector<256x256xf32>, vector<256x256xf32> -> vector<256x256xf32>
    %5 = arith.mulf %2, %2 : vector<256x256xf32>
    %6 = arith.mulf %4, %4 : vector<256x256xf32>
    %7 = arith.addf %5, %6 : vector<256x256xf32>
    %8 = math.sqrt %7 : vector<256x256xf32>
    %c0_6 = arith.constant 0 : index
    %c0_7 = arith.constant 0 : index
    %9 = vector.load %arg4[%c0_6, %c0_7] : memref<256x128xf32, #tpu.memory_space<vmem>>, vector<256x128xf32>
    %cst_8 = arith.constant dense<0.000000e+00> : vector<256x128xf32>
    %10 = tpu.matmul %8, %9, %cst_8 {dimension_numbers = #tpu.dot_dimension_numbers<[1], [0], [0], [1], [0, 0, 1, 1], [], []>} : vector<256x256xf32>, vector<256x128xf32>, vector<256x128xf32> -> vector<256x128xf32>
    %cst_9 = arith.constant 9.99999974E-6 : f32
    %11 = vector.broadcast %cst_9 : f32 to vector<256x128xf32>
    %12 = arith.maximumf %10, %11 : vector<256x128xf32>
    %13 = math.log %12 : vector<256x128xf32>
    %cst_10 = arith.constant 0.694871187 : f32
    %14 = vector.broadcast %cst_10 : f32 to vector<256x128xf32>
    %15 = arith.mulf %14, %13 : vector<256x128xf32>
    %cst_11 = arith.constant 2.400000e+00 : f32
    %16 = vector.broadcast %cst_11 : f32 to vector<256x128xf32>
    %17 = arith.addf %15, %16 : vector<256x128xf32>
    %cst_12 = arith.constant -4.000000e+00 : f32
    %cst_13 = arith.constant 4.000000e+00 : f32
    %18 = vector.broadcast %cst_12 : f32 to vector<256x128xf32>
    %19 = arith.maximumf %18, %17 : vector<256x128xf32>
    %20 = vector.broadcast %cst_13 : f32 to vector<256x128xf32>
    %21 = arith.minimumf %20, %19 : vector<256x128xf32>
    %c0_14 = arith.constant 0 : index
    %c0_15 = arith.constant 0 : index
    %22 = vector.load %arg5[%c0_14, %c0_15] : memref<256x128xf32, #tpu.memory_space<vmem>>, vector<256x128xf32>
    tpu.vector_store %arg5[%c0_14, %c0_15], %21 {strides = array<i32>} : memref<256x128xf32, #tpu.memory_space<vmem>>, vector<256x128xf32>,
    return
  }
  func.func @transform_0(%arg0: i32) -> (i32, i32) {
    %c0_i32 = arith.constant 0 : i32
    %c0_i32_0 = arith.constant 0 : i32
    return %arg0, %c0_i32 : i32, i32
  }
  func.func @transform_1(%arg0: i32) -> (i32, i32) {
    %c0_i32 = arith.constant 0 : i32
    %c0_i32_0 = arith.constant 0 : i32
    %c0_i32_1 = arith.constant 0 : i32
    return %c0_i32, %c0_i32_0 : i32, i32
  }
  func.func @transform_2(%arg0: i32) -> (i32, i32) {
    %c0_i32 = arith.constant 0 : i32
    %c0_i32_0 = arith.constant 0 : i32
    %c0_i32_1 = arith.constant 0 : i32
    return %c0_i32, %c0_i32_0 : i32, i32
  }
  func.func @transform_3(%arg0: i32) -> (i32, i32) {
    %c0_i32 = arith.constant 0 : i32
    %c0_i32_0 = arith.constant 0 : i32
    %c0_i32_1 = arith.constant 0 : i32
    return %c0_i32, %c0_i32_0 : i32, i32
  }
  func.func @transform_4(%arg0: i32) -> (i32, i32) {
    %c0_i32 = arith.constant 0 : i32
    %c0_i32_0 = arith.constant 0 : i32
    return %arg0, %c0_i32 : i32, i32
  }
}

</mosaic_0001>

<bundles_post_ra>
// kernel: _audio_loader_jit.1
= control target key start
LH: loop header
LB: loop body
LE: loop exit
PB: predicated region body
PF: predicated region fallthrough
CT: control target
= control target key end

     0   :  { %s4171_s1 = inlined_call_operand.vmem [shape: f32[256,256], index: 1, kind: input, shape index: {}]   ;;  %s4172_s0 = inlined_call_operand.vmem [shape: f32[256,256], index: 0, kind: input, shape index: {}]   ;;  %s4173_s2 = inlined_call_operand.vmem [shape: f32[256,256], index: 2, kind: input, shape index: {}]   ;;  %s4174_s3 = inlined_call_operand.vmem [shape: f32[256,128], index: 3, kind: input, shape index: {}]   ;;  %s4175_s4 = inlined_call_operand.vmem [shape: f32[256,128], index: 4, kind: output, shape index: {}]  }
   0x1   :  { %v112_v0 = vld [vmem:[%s4171_s1 + $0xf8] sm:$0xff]  ;;  %v111_v1 = vld [vmem:[%s4171_s1 + $0xf0] sm:$0xff]  ;;  %v110_v2 = vld [vmem:[%s4171_s1 + $0xe8] sm:$0xff] }
   0x2   :  { %1912 = vmatprep.subr.mxu1 %v112_v0  ;;  %v109_v3 = vld [vmem:[%s4171_s1 + $0xe0] sm:$0xff]  ;;  %145 = vmatprep.subr.mxu0 %v112_v0  ;;  %v108_v4 = vld [vmem:[%s4171_s1 + $0xd8] sm:$0xff]  ;;  %v107_v5 = vld [vmem:[%s4171_s1 + $0xd0] sm:$0xff] }
   0x3   :  { %1944 = vmatpush1.msra.mxu1 %v111_v1  ;;  %146 = vmatpush1.msra.mxu0 %v111_v1  ;;  %v106_v6 = vld [vmem:[%s4171_s1 + $0xc8] sm:$0xff]  ;;  %v105_v7 = vld [vmem:[%s4171_s1 + $0xc0] sm:$0xff]  ;;  %v104_v8 = vld [vmem:[%s4171_s1 + $0xb8] sm:$0xff] }
   0x4   :  { %1913 = vmatprep.subr.mxu1 %v110_v2  ;;  %147 = vmatprep.subr.mxu0 %v110_v2  ;;  %v103_v9 = vld [vmem:[%s4171_s1 + $0xb0] sm:$0xff]  ;;  %v102_v10 = vld [vmem:[%s4171_s1 + $0xa8] sm:$0xff]  ;;  %v101_v11 = vld [vmem:[%s4171_s1 + $0xa0] sm:$0xff] }
   0x5   :  { %1945 = vmatpush1.msra.mxu1 %v109_v3  ;;  %148 = vmatpush1.msra.mxu0 %v109_v3  ;;  %v100_v12 = vld [vmem:[%s4171_s1 + $0x98] sm:$0xff]  ;;  %v99_v13 = vld [vmem:[%s4171_s1 + $0x90] sm:$0xff]  ;;  %v98_v14 = vld [vmem:[%s4171_s1 + $0x88] sm:$0xff] }
   0x6   :  { %1914 = vmatprep.subr.mxu1 %v108_v4  ;;  %149 = vmatprep.subr.mxu0 %v108_v4  ;;  %v97_v15 = vld [vmem:[%s4171_s1 + $0x80] sm:$0xff]  ;;  %v96_v16 = vld [vmem:[%s4171_s1 + $0x78] sm:$0xff]  ;;  %v95_v17 = vld [vmem:[%s4171_s1 + $0x70] sm:$0xff] }
   0x7   :  { %1946 = vmatpush1.msra.mxu1 %v107_v5  ;;  %150 = vmatpush1.msra.mxu0 %v107_v5  ;;  %v94_v18 = vld [vmem:[%s4171_s1 + $0x68] sm:$0xff]  ;;  %v93_v19 = vld [vmem:[%s4171_s1 + $0x60] sm:$0xff]  ;;  %v92_v20 = vld [vmem:[%s4171_s1 + $0x58] sm:$0xff] }
   0x8   :  { %1915 = vmatprep.subr.mxu1 %v106_v6  ;;  %151 = vmatprep.subr.mxu0 %v106_v6  ;;  %v91_v21 = vld [vmem:[%s4171_s1 + $0x50] sm:$0xff]  ;;  %v90_v22 = vld [vmem:[%s4171_s1 + $0x48] sm:$0xff]  ;;  %v89_v23 = vld [vmem:[%s4171_s1 + $0x40] sm:$0xff] }
   0x9   :  { %1947 = vmatpush1.msra.mxu1 %v105_v7  ;;  %152 = vmatpush1.msra.mxu0 %v105_v7  ;;  %v2270_v24 = vld [vmem:[%s4172_s0 + $0x108] sm:$0xff]  ;;  %v88_v25 = vld [vmem:[%s4171_s1 + $0x38] sm:$0xff]  ;;  %v87_v26 = vld [vmem:[%s4171_s1 + $0x30] sm:$0xff] }
   0xa   :  { %1916 = vmatprep.subr.mxu1 %v104_v8  ;;  %153 = vmatprep.subr.mxu0 %v104_v8  ;;  %v86_v27 = vld [vmem:[%s4171_s1 + $0x28] sm:$0xff]  ;;  %v85_v28 = vld [vmem:[%s4171_s1 + $0x20] sm:$0xff]  ;;  %v84_v29 = vld [vmem:[%s4171_s1 + $0x18] sm:$0xff] }
   0xb   :  { %1948 = vmatpush1.msra.mxu1 %v103_v9  ;;  %154 = vmatpush1.msra.mxu0 %v103_v9  ;;  %v83_v30 = vld [vmem:[%s4171_s1 + $0x10] sm:$0xff]  ;;  %v82_v31 = vld [vmem:[%s4171_s1 + $0x8] sm:$0xff]  ;;  %v81_v32 = vld [vmem:[%s4171_s1] sm:$0xff] }
   0xc   :  { %1917 = vmatprep.subr.mxu1 %v102_v10  ;;  %155 = vmatprep.subr.mxu0 %v102_v10  ;;  %v144_v33 = vld [vmem:[%s4171_s1 + $0x1f8] sm:$0xff]  ;;  %v143_v34 = vld [vmem:[%s4171_s1 + $0x1f0] sm:$0xff]  ;;  %v142_v35 = vld [vmem:[%s4171_s1 + $0x1e8] sm:$0xff] }
   0xd   :  { %1949 = vmatpush1.msra.mxu1 %v101_v11  ;;  %156 = vmatpush1.msra.mxu0 %v101_v11  ;;  %v141_v36 = vld [vmem:[%s4171_s1 + $0x1e0] sm:$0xff]  ;;  %v140_v37 = vld [vmem:[%s4171_s1 + $0x1d8] sm:$0xff]  ;;  %v139_v38 = vld [vmem:[%s4171_s1 + $0x1d0] sm:$0xff] }
   0xe   :  { %1918 = vmatprep.subr.mxu1 %v100_v12  ;;  %157 = vmatprep.subr.mxu0 %v100_v12  ;;  %v138_v39 = vld [vmem:[%s4171_s1 + $0x1c8] sm:$0xff]  ;;  %v137_v40 = vld [vmem:[%s4171_s1 + $0x1c0] sm:$0xff]  ;;  %v136_v41 = vld [vmem:[%s4171_s1 + $0x1b8] sm:$0xff] }
   0xf   :  { %1950 = vmatpush1.msra.mxu1 %v99_v13  ;;  %158 = vmatpush1.msra.mxu0 %v99_v13  ;;  %v135_v42 = vld [vmem:[%s4171_s1 + $0x1b0] sm:$0xff]  ;;  %v134_v43 = vld [vmem:[%s4171_s1 + $0x1a8] sm:$0xff]  ;;  %v133_v44 = vld [vmem:[%s4171_s1 + $0x1a0] sm:$0xff] }
  0x10   :  { %1919 = vmatprep.subr.mxu1 %v98_v14  ;;  %159 = vmatprep.subr.mxu0 %v98_v14  ;;  %v132_v45 = vld [vmem:[%s4171_s1 + $0x198] sm:$0xff]  ;;  %v131_v46 = vld [vmem:[%s4171_s1 + $0x190] sm:$0xff]  ;;  %v130_v47 = vld [vmem:[%s4171_s1 + $0x188] sm:$0xff] }
  0x11   :  { %1951 = vmatpush1.msra.mxu1 %v97_v15  ;;  %160 = vmatpush1.msra.mxu0 %v97_v15  ;;  %v129_v48 = vld [vmem:[%s4171_s1 + $0x180] sm:$0xff]  ;;  %v128_v49 = vld [vmem:[%s4171_s1 + $0x178] sm:$0xff]  ;;  %v127_v50 = vld [vmem:[%s4171_s1 + $0x170] sm:$0xff] }
  0x12   :  { %1920 = vmatprep.subr.mxu1 %v96_v16  ;;  %161 = vmatprep.subr.mxu0 %v96_v16  ;;  %v126_v51 = vld [vmem:[%s4171_s1 + $0x168] sm:$0xff]  ;;  %v125_v52 = vld [vmem:[%s4171_s1 + $0x160] sm:$0xff]  ;;  %v124_v53 = vld [vmem:[%s4171_s1 + $0x158] sm:$0xff] }
  0x13   :  { %1952 = vmatpush1.msra.mxu1 %v95_v17  ;;  %162 = vmatpush1.msra.mxu0 %v95_v17  ;;  %v123_v54 = vld [vmem:[%s4171_s1 + $0x150] sm:$0xff]  ;;  %v122_v55 = vld [vmem:[%s4171_s1 + $0x148] sm:$0xff]  ;;  %v121_v56 = vld [vmem:[%s4171_s1 + $0x140] sm:$0xff] }
  0x14   :  { %1921 = vmatprep.subr.mxu1 %v94_v18  ;;  %163 = vmatprep.subr.mxu0 %v94_v18  ;;  %v120_v57 = vld [vmem:[%s4171_s1 + $0x138] sm:$0xff]  ;;  %v119_v58 = vld [vmem:[%s4171_s1 + $0x130] sm:$0xff]  ;;  %v118_v59 = vld [vmem:[%s4171_s1 + $0x128] sm:$0xff] }
  0x15   :  { %1953 = vmatpush1.msra.mxu1 %v93_v19  ;;  %164 = vmatpush1.msra.mxu0 %v93_v19  ;;  %v117_v60 = vld [vmem:[%s4171_s1 + $0x120] sm:$0xff]  ;;  %v116_v61 = vld [vmem:[%s4171_s1 + $0x118] sm:$0xff]  ;;  %v115_v62 = vld [vmem:[%s4171_s1 + $0x110] sm:$0xff] }
  0x16   :  { %1922 = vmatprep.subr.mxu1 %v92_v20  ;;  %165 = vmatprep.subr.mxu0 %v92_v20  ;;  %v114_v63 = vld [vmem:[%s4171_s1 + $0x108] sm:$0xff]  ;;  %v113_v0 = vld [vmem:[%s4171_s1 + $0x100] sm:$0xff]  ;;  %v433_v2 = vld [vmem:[%s4173_s2 + $0xf8] sm:$0xff] }
  0x17   :  { %1954 = vmatpush1.msra.mxu1 %v91_v21  ;;  %305 = vmatprep.mubr.f32.mxu1 %v2270_v24  ;;  %v2396_v1 = vld [vmem:[%s4172_s0 + $0x100] sm:$0xff]  ;;  %v432_v3 = vld [vmem:[%s4173_s2 + $0xf0] sm:$0xff]  ;;  %v2407_v4 = vld [vmem:[%s4172_s0 + $0x118] sm:$0xff] }
  0x18   :  { %1923 = vmatprep.subr.mxu1 %v90_v22  ;;  %166 = vmatpush1.msra.mxu0 %v91_v21  ;;  %v431_v5 = vld [vmem:[%s4173_s2 + $0xe8] sm:$0xff]  ;;  %v430_v6 = vld [vmem:[%s4173_s2 + $0xe0] sm:$0xff]  ;;  %v2425_v8 = vld [vmem:[%s4172_s0 + $0x110] sm:$0xff] }
  0x19   :  { %1955 = vmatpush1.msra.mxu1 %v89_v23  ;;  %167 = vmatprep.subr.mxu0 %v90_v22  ;;  %v2419_v7 = vld [vmem:[%s4172_s0 + $0x8] sm:$0xff]  ;;  %v429_v9 = vld [vmem:[%s4173_s2 + $0xd8] sm:$0xff]  ;;  %v428_v10 = vld [vmem:[%s4173_s2 + $0xd0] sm:$0xff] }
  0x1a   :  { %1924 = vmatprep.subr.mxu1 %v88_v25  ;;  %168 = vmatpush1.msra.mxu0 %v89_v23  ;;  %v2436_v11 = vld [vmem:[%s4172_s0 + $0x128] sm:$0xff]  ;;  %v2445_v13 = vld [vmem:[%s4172_s0] sm:$0xff]  ;;  %v2454_v15 = vld [vmem:[%s4172_s0 + $0x18] sm:$0xff] }
  0x1b   :  { %1956 = vmatpush1.msra.mxu1 %v87_v26  ;;  %169 = vmatprep.subr.mxu0 %v88_v25  ;;  %v427_v12 = vld [vmem:[%s4173_s2 + $0xc8] sm:$0xff]  ;;  %v426_v14 = vld [vmem:[%s4173_s2 + $0xc0] sm:$0xff]  ;;  %v425_v17 = vld [vmem:[%s4173_s2 + $0xb8] sm:$0xff] }
  0x1c   :  { %1925 = vmatprep.subr.mxu1 %v86_v27  ;;  %170 = vmatpush1.msra.mxu0 %v87_v26  ;;  %v2460_v16 = vld [vmem:[%s4172_s0 + $0x120] sm:$0xff]  ;;  %v424_v18 = vld [vmem:[%s4173_s2 + $0xb0] sm:$0xff]  ;;  %v2471_v19 = vld [vmem:[%s4172_s0 + $0x138] sm:$0xff] }
  0x1d   :  { %1957 = vmatpush1.msra.mxu1 %v85_v28  ;;  %171 = vmatprep.subr.mxu0 %v86_v27  ;;  %v423_v20 = vld [vmem:[%s4173_s2 + $0xa8] sm:$0xff]  ;;  %v2481_v21 = vld [vmem:[%s4172_s0 + $0x10] sm:$0xff]  ;;  %v422_v22 = vld [vmem:[%s4173_s2 + $0xa0] sm:$0xff] }
  0x1e   :  { %1926 = vmatprep.subr.mxu1 %v84_v29  ;;  %172 = vmatpush1.msra.mxu0 %v85_v28  ;;  %v2490_v23 = vld [vmem:[%s4172_s0 + $0x28] sm:$0xff]  ;;  %v2496_v25 = vld [vmem:[%s4172_s0 + $0x130] sm:$0xff]  ;;  %v421_v26 = vld [vmem:[%s4173_s2 + $0x98] sm:$0xff] }
  0x1f   :  { %1958 = vmatpush1.msra.mxu1 %v83_v30  ;;  %173 = vmatprep.subr.mxu0 %v84_v29  ;;  %v420_v27 = vld [vmem:[%s4173_s2 + $0x90] sm:$0xff]  ;;  %v2507_v28 = vld [vmem:[%s4172_s0 + $0x148] sm:$0xff] }
  0x20   :  { %1927 = vmatprep.subr.mxu1 %v82_v31  ;;  %174 = vmatpush1.msra.mxu0 %v83_v30  ;;  %v419_v29 = vld [vmem:[%s4173_s2 + $0x88] sm:$0xff]  ;;  %v2517_v30 = vld [vmem:[%s4172_s0 + $0x20] sm:$0xff] }
  0x21   :  { %1959 = vmatpush1.msra.mxu1 %v81_v32  ;;  %175 = vmatprep.subr.mxu0 %v82_v31  ;;  %v418_v31 = vld [vmem:[%s4173_s2 + $0x80] sm:$0xff] }
  0x22   :  { %1928 = vmatprep.subr.mxu1 %v144_v33  ;;  %176 = vmatpush1.msra.mxu0 %v81_v32  ;;  %v2526_v32 = vld [vmem:[%s4172_s0 + $0x38] sm:$0xff] }
  0x23   :  { %1960 = vmatpush2.msra.mxu1 %v143_v34  ;;  %177 = vmatprep.subr.mxu0 %v144_v33  ;;  %v2532_v33 = vld [vmem:[%s4172_s0 + $0x140] sm:$0xff] }
  0x24   :  { %1929 = vmatprep.subr.mxu1 %v142_v35  ;;  %178 = vmatpush2.msra.mxu0 %v143_v34  ;;  %v417_v34 = vld [vmem:[%s4173_s2 + $0x78] sm:$0xff] }
  0x25   :  { %1961 = vmatpush2.msra.mxu1 %v141_v36  ;;  %179 = vmatprep.subr.mxu0 %v142_v35  ;;  %v416_v35 = vld [vmem:[%s4173_s2 + $0x70] sm:$0xff] }
  0x26   :  { %1930 = vmatprep.subr.mxu1 %v140_v37  ;;  %180 = vmatpush2.msra.mxu0 %v141_v36  ;;  %v2543_v36 = vld [vmem:[%s4172_s0 + $0x158] sm:$0xff] }
  0x27   :  { %1962 = vmatpush2.msra.mxu1 %v139_v38  ;;  %181 = vmatprep.subr.mxu0 %v140_v37  ;;  %v415_v37 = vld [vmem:[%s4173_s2 + $0x68] sm:$0xff] }
  0x28   :  { %1931 = vmatprep.subr.mxu1 %v138_v39  ;;  %182 = vmatpush2.msra.mxu0 %v139_v38  ;;  %v2553_v38 = vld [vmem:[%s4172_s0 + $0x30] sm:$0xff] }
  0x29   :  { %1963 = vmatpush2.msra.mxu1 %v137_v40  ;;  %183 = vmatprep.subr.mxu0 %v138_v39  ;;  %v414_v39 = vld [vmem:[%s4173_s2 + $0x60] sm:$0xff] }
  0x2a   :  { %1932 = vmatprep.subr.mxu1 %v136_v41  ;;  %184 = vmatpush2.msra.mxu0 %v137_v40  ;;  %v2562_v40 = vld [vmem:[%s4172_s0 + $0x48] sm:$0xff] }
  0x2b   :  { %1964 = vmatpush2.msra.mxu1 %v135_v42  ;;  %185 = vmatprep.subr.mxu0 %v136_v41  ;;  %v2568_v41 = vld [vmem:[%s4172_s0 + $0x150] sm:$0xff] }
  0x2c   :  { %1933 = vmatprep.subr.mxu1 %v134_v43  ;;  %186 = vmatpush2.msra.mxu0 %v135_v42  ;;  %v413_v42 = vld [vmem:[%s4173_s2 + $0x58] sm:$0xff] }
  0x2d   :  { %1965 = vmatpush2.msra.mxu1 %v133_v44  ;;  %187 = vmatprep.subr.mxu0 %v134_v43  ;;  %v412_v43 = vld [vmem:[%s4173_s2 + $0x50] sm:$0xff] }
  0x2e   :  { %1934 = vmatprep.subr.mxu1 %v132_v45  ;;  %188 = vmatpush2.msra.mxu0 %v133_v44  ;;  %v2579_v44 = vld [vmem:[%s4172_s0 + $0x168] sm:$0xff] }
  0x2f   :  { %1966 = vmatpush2.msra.mxu1 %v131_v46  ;;  %189 = vmatprep.subr.mxu0 %v132_v45  ;;  %v411_v45 = vld [vmem:[%s4173_s2 + $0x48] sm:$0xff] }
  0x30   :  { %1935 = vmatprep.subr.mxu1 %v130_v47  ;;  %190 = vmatpush2.msra.mxu0 %v131_v46  ;;  %v2589_v46 = vld [vmem:[%s4172_s0 + $0x40] sm:$0xff] }
  0x31   :  { %1967 = vmatpush2.msra.mxu1 %v129_v48  ;;  %191 = vmatprep.subr.mxu0 %v130_v47  ;;  %v410_v47 = vld [vmem:[%s4173_s2 + $0x40] sm:$0xff] }
  0x32   :  { %1936 = vmatprep.subr.mxu1 %v128_v49  ;;  %192 = vmatpush2.msra.mxu0 %v129_v48  ;;  %v2598_v48 = vld [vmem:[%s4172_s0 + $0x58] sm:$0xff] }
  0x33   :  { %1968 = vmatpush2.msra.mxu1 %v127_v50  ;;  %193 = vmatprep.subr.mxu0 %v128_v49  ;;  %v2604_v49 = vld [vmem:[%s4172_s0 + $0x160] sm:$0xff] }
  0x34   :  { %1937 = vmatprep.subr.mxu1 %v126_v51  ;;  %194 = vmatpush2.msra.mxu0 %v127_v50  ;;  %v409_v50 = vld [vmem:[%s4173_s2 + $0x38] sm:$0xff] }
  0x35   :  { %1969 = vmatpush2.msra.mxu1 %v125_v52  ;;  %195 = vmatprep.subr.mxu0 %v126_v51  ;;  %v408_v51 = vld [vmem:[%s4173_s2 + $0x30] sm:$0xff] }
  0x36   :  { %1938 = vmatprep.subr.mxu1 %v124_v53  ;;  %196 = vmatpush2.msra.mxu0 %v125_v52  ;;  %v2615_v52 = vld [vmem:[%s4172_s0 + $0x178] sm:$0xff] }
  0x37   :  { %1970 = vmatpush2.msra.mxu1 %v123_v54  ;;  %197 = vmatprep.subr.mxu0 %v124_v53  ;;  %v407_v53 = vld [vmem:[%s4173_s2 + $0x28] sm:$0xff] }
  0x38   :  { %1939 = vmatprep.subr.mxu1 %v122_v55  ;;  %198 = vmatpush2.msra.mxu0 %v123_v54  ;;  %v2625_v54 = vld [vmem:[%s4172_s0 + $0x50] sm:$0xff] }
  0x39   :  { %1971 = vmatpush2.msra.mxu1 %v121_v56  ;;  %199 = vmatprep.subr.mxu0 %v122_v55  ;;  %v406_v55 = vld [vmem:[%s4173_s2 + $0x20] sm:$0xff] }
  0x3a   :  { %1940 = vmatprep.subr.mxu1 %v120_v57  ;;  %200 = vmatpush2.msra.mxu0 %v121_v56  ;;  %v2634_v56 = vld [vmem:[%s4172_s0 + $0x68] sm:$0xff] }
  0x3b   :  { %1972 = vmatpush2.msra.mxu1 %v119_v58  ;;  %201 = vmatprep.subr.mxu0 %v120_v57  ;;  %v2640_v57 = vld [vmem:[%s4172_s0 + $0x170] sm:$0xff] }
  0x3c   :  { %1941 = vmatprep.subr.mxu1 %v118_v59  ;;  %202 = vmatpush2.msra.mxu0 %v119_v58  ;;  %v405_v58 = vld [vmem:[%s4173_s2 + $0x18] sm:$0xff] }
  0x3d   :  { %1973 = vmatpush2.msra.mxu1 %v117_v60  ;;  %203 = vmatprep.subr.mxu0 %v118_v59  ;;  %v404_v59 = vld [vmem:[%s4173_s2 + $0x10] sm:$0xff] }
  0x3e   :  { %1942 = vmatprep.subr.mxu1 %v116_v61  ;;  %204 = vmatpush2.msra.mxu0 %v117_v60  ;;  %v2651_v60 = vld [vmem:[%s4172_s0 + $0x188] sm:$0xff] }
  0x3f   :  { %1974 = vmatpush2.msra.mxu1 %v115_v62  ;;  %205 = vmatprep.subr.mxu0 %v116_v61  ;;  %v403_v61 = vld [vmem:[%s4173_s2 + $0x8] sm:$0xff] }
  0x40   :  { %1943 = vmatprep.subr.mxu1 %v114_v63  ;;  %206 = vmatpush2.msra.mxu0 %v115_v62  ;;  %v2661_v62 = vld [vmem:[%s4172_s0 + $0x60] sm:$0xff] }
  0x41   :  { %1975 = vmatpush2.msra.mxu1 %v113_v0  ;;  %207 = vmatprep.subr.mxu0 %v114_v63  ;;  %v402_v63 = vld [vmem:[%s4173_s2] sm:$0xff] }
  0x42   :  { %306 = vmatmul.mubr.f32.vlgmr.msra.gmra.mxu1 %v2396_v1  ;;  %466 = vmatprep.subr.mxu1 %v433_v2  ;;  %v2676_v2 = vld [vmem:[%s4172_s0 + $0x180] sm:$0xff] }
  0x43   :  { %467 = vmatpush1.msra.mxu1 %v432_v3  ;;  %311 = vmatprep.mubr.f32.mxu1 %v2407_v4  ;;  %v465_v3 = vld [vmem:[%s4173_s2 + $0x1f8] sm:$0xff] }
  0x44   :  { %468 = vmatprep.subr.mxu1 %v431_v5  ;;  %208 = vmatpush2.msra.mxu0 %v113_v0  ;;  %v2670_v0 = vld [vmem:[%s4172_s0 + $0x78] sm:$0xff]  ;;  %v464_v5 = vld [vmem:[%s4173_s2 + $0x1f0] sm:$0xff] }
  0x45   :  { %469 = vmatpush1.msra.mxu1 %v430_v6  ;;  %209 = vmatprep.mubr.f32.mxu0 %v2419_v7  ;;  %v2687_v6 = vld [vmem:[%s4172_s0 + $0x198] sm:$0xff] }
  0x46   :  { %312 = vmatmul.mubr.f32.gmra.mxu1 %v2425_v8  ;;  %470 = vmatprep.subr.mxu1 %v429_v9  ;;  %v463_v9 = vld [vmem:[%s4173_s2 + $0x1e8] sm:$0xff] }
  0x47   :  { %471 = vmatpush1.msra.mxu1 %v428_v10  ;;  %317 = vmatprep.mubr.f32.mxu1 %v2436_v11  ;;  %v2697_v10 = vld [vmem:[%s4172_s0 + $0x70] sm:$0xff] }
  0x48   :  { %472 = vmatprep.subr.mxu1 %v427_v12  ;;  %210 = vmatmul.mubr.f32.vlgmr.msra.gmra.mxu0 %v2445_v13  ;;  %v462_v12 = vld [vmem:[%s4173_s2 + $0x1e0] sm:$0xff] }
  0x49   :  { %473 = vmatpush1.msra.mxu1 %v426_v14  ;;  %215 = vmatprep.mubr.f32.mxu0 %v2454_v15  ;;  %v2706_v14 = vld [vmem:[%s4172_s0 + $0x88] sm:$0xff] }
  0x4a   :  { %318 = vmatmul.mubr.f32.gmra.mxu1 %v2460_v16  ;;  %474 = vmatprep.subr.mxu1 %v425_v17  ;;  %v2712_v17 = vld [vmem:[%s4172_s0 + $0x190] sm:$0xff] }
  0x4b   :  { %475 = vmatpush1.msra.mxu1 %v424_v18  ;;  %323 = vmatprep.mubr.f32.mxu1 %v2471_v19  ;;  %v461_v18 = vld [vmem:[%s4173_s2 + $0x1d8] sm:$0xff] }
  0x4c   :  { %476 = vmatprep.subr.mxu1 %v423_v20  ;;  %216 = vmatmul.mubr.f32.gmra.mxu0 %v2481_v21  ;;  %v460_v20 = vld [vmem:[%s4173_s2 + $0x1d0] sm:$0xff] }
  0x4d   :  { %477 = vmatpush1.msra.mxu1 %v422_v22  ;;  %221 = vmatprep.mubr.f32.mxu0 %v2490_v23  ;;  %v2723_v22 = vld [vmem:[%s4172_s0 + $0x1a8] sm:$0xff] }
  0x4e   :  { %324 = vmatmul.mubr.f32.gmra.mxu1 %v2496_v25  ;;  %478 = vmatprep.subr.mxu1 %v421_v26  ;;  %v459_v26 = vld [vmem:[%s4173_s2 + $0x1c8] sm:$0xff] }
  0x4f   :  { %479 = vmatpush1.msra.mxu1 %v420_v27  ;;  %329 = vmatprep.mubr.f32.mxu1 %v2507_v28  ;;  %v2733_v27 = vld [vmem:[%s4172_s0 + $0x80] sm:$0xff] }
  0x50   :  { %480 = vmatprep.subr.mxu1 %v419_v29  ;;  %222 = vmatmul.mubr.f32.gmra.mxu0 %v2517_v30  ;;  %v458_v29 = vld [vmem:[%s4173_s2 + $0x1c0] sm:$0xff] }
  0x51   :  { %481 = vmatpush1.msra.mxu1 %v418_v31  ;;  %227 = vmatprep.mubr.f32.mxu0 %v2526_v32  ;;  %v2742_v31 = vld [vmem:[%s4172_s0 + $0x98] sm:$0xff] }
  0x52   :  { %330 = vmatmul.mubr.f32.gmra.mxu1 %v2532_v33  ;;  %482 = vmatprep.subr.mxu1 %v417_v34  ;;  %v2748_v34 = vld [vmem:[%s4172_s0 + $0x1a0] sm:$0xff] }
  0x53   :  { %483 = vmatpush1.msra.mxu1 %v416_v35  ;;  %335 = vmatprep.mubr.f32.mxu1 %v2543_v36  ;;  %v457_v35 = vld [vmem:[%s4173_s2 + $0x1b8] sm:$0xff] }
  0x54   :  { %484 = vmatprep.subr.mxu1 %v415_v37  ;;  %228 = vmatmul.mubr.f32.gmra.mxu0 %v2553_v38  ;;  %v456_v37 = vld [vmem:[%s4173_s2 + $0x1b0] sm:$0xff] }
  0x55   :  { %485 = vmatpush1.msra.mxu1 %v414_v39  ;;  %233 = vmatprep.mubr.f32.mxu0 %v2562_v40  ;;  %v2759_v39 = vld [vmem:[%s4172_s0 + $0x1b8] sm:$0xff] }
  0x56   :  { %336 = vmatmul.mubr.f32.gmra.mxu1 %v2568_v41  ;;  %486 = vmatprep.subr.mxu1 %v413_v42  ;;  %v455_v42 = vld [vmem:[%s4173_s2 + $0x1a8] sm:$0xff] }
  0x57   :  { %487 = vmatpush1.msra.mxu1 %v412_v43  ;;  %341 = vmatprep.mubr.f32.mxu1 %v2579_v44  ;;  %v2769_v43 = vld [vmem:[%s4172_s0 + $0x90] sm:$0xff] }
  0x58   :  { %488 = vmatprep.subr.mxu1 %v411_v45  ;;  %234 = vmatmul.mubr.f32.gmra.mxu0 %v2589_v46  ;;  %v454_v45 = vld [vmem:[%s4173_s2 + $0x1a0] sm:$0xff] }
  0x59   :  { %489 = vmatpush1.msra.mxu1 %v410_v47  ;;  %239 = vmatprep.mubr.f32.mxu0 %v2598_v48  ;;  %v2778_v47 = vld [vmem:[%s4172_s0 + $0xa8] sm:$0xff] }
  0x5a   :  { %342 = vmatmul.mubr.f32.gmra.mxu1 %v2604_v49  ;;  %490 = vmatprep.subr.mxu1 %v409_v50  ;;  %v2784_v50 = vld [vmem:[%s4172_s0 + $0x1b0] sm:$0xff] }
  0x5b   :  { %491 = vmatpush1.msra.mxu1 %v408_v51  ;;  %347 = vmatprep.mubr.f32.mxu1 %v2615_v52  ;;  %v453_v51 = vld [vmem:[%s4173_s2 + $0x198] sm:$0xff] }
  0x5c   :  { %492 = vmatprep.subr.mxu1 %v407_v53  ;;  %240 = vmatmul.mubr.f32.gmra.mxu0 %v2625_v54  ;;  %v452_v53 = vld [vmem:[%s4173_s2 + $0x190] sm:$0xff] }
  0x5d   :  { %493 = vmatpush1.msra.mxu1 %v406_v55  ;;  %245 = vmatprep.mubr.f32.mxu0 %v2634_v56  ;;  %v2795_v55 = vld [vmem:[%s4172_s0 + $0x1c8] sm:$0xff] }
  0x5e   :  { %348 = vmatmul.mubr.f32.gmra.mxu1 %v2640_v57  ;;  %494 = vmatprep.subr.mxu1 %v405_v58  ;;  %v451_v58 = vld [vmem:[%s4173_s2 + $0x188] sm:$0xff] }
  0x5f   :  { %495 = vmatpush1.msra.mxu1 %v404_v59  ;;  %353 = vmatprep.mubr.f32.mxu1 %v2651_v60  ;;  %v2805_v59 = vld [vmem:[%s4172_s0 + $0xa0] sm:$0xff] }
  0x60   :  { %496 = vmatprep.subr.mxu1 %v403_v61  ;;  %246 = vmatmul.mubr.f32.gmra.mxu0 %v2661_v62  ;;  %v450_v61 = vld [vmem:[%s4173_s2 + $0x180] sm:$0xff] }
  0x61   :  { %497 = vmatpush1.msra.mxu1 %v402_v63  ;;  %251 = vmatprep.mubr.f32.mxu0 %v2670_v0  ;;  %v2814_v63 = vld [vmem:[%s4172_s0 + $0xb8] sm:$0xff] }
  0x62   :  { %354 = vmatmul.mubr.f32.gmra.mxu1 %v2676_v2  ;;  %498 = vmatprep.subr.mxu1 %v465_v3  ;;  %v2820_v3 = vld [vmem:[%s4172_s0 + $0x1c0] sm:$0xff] }
  0x63   :  { %499 = vmatpush2.msra.mxu1 %v464_v5  ;;  %359 = vmatprep.mubr.f32.mxu1 %v2687_v6  ;;  %v449_v5 = vld [vmem:[%s4173_s2 + $0x178] sm:$0xff] }
  0x64   :  { %500 = vmatprep.subr.mxu1 %v463_v9  ;;  %252 = vmatmul.mubr.f32.gmra.mxu0 %v2697_v10  ;;  %v448_v9 = vld [vmem:[%s4173_s2 + $0x170] sm:$0xff] }
  0x65   :  { %501 = vmatpush2.msra.mxu1 %v462_v12  ;;  %257 = vmatprep.mubr.f32.mxu0 %v2706_v14  ;;  %v2831_v12 = vld [vmem:[%s4172_s0 + $0x1d8] sm:$0xff] }
  0x66   :  { %360 = vmatmul.mubr.f32.gmra.mxu1 %v2712_v17  ;;  %502 = vmatprep.subr.mxu1 %v461_v18  ;;  %v447_v18 = vld [vmem:[%s4173_s2 + $0x168] sm:$0xff] }
  0x67   :  { %503 = vmatpush2.msra.mxu1 %v460_v20  ;;  %365 = vmatprep.mubr.f32.mxu1 %v2723_v22  ;;  %v2841_v20 = vld [vmem:[%s4172_s0 + $0xb0] sm:$0xff] }
  0x68   :  { %504 = vmatprep.subr.mxu1 %v459_v26  ;;  %258 = vmatmul.mubr.f32.gmra.mxu0 %v2733_v27  ;;  %v446_v26 = vld [vmem:[%s4173_s2 + $0x160] sm:$0xff] }
  0x69   :  { %505 = vmatpush2.msra.mxu1 %v458_v29  ;;  %263 = vmatprep.mubr.f32.mxu0 %v2742_v31  ;;  %v2850_v29 = vld [vmem:[%s4172_s0 + $0xc8] sm:$0xff] }
  0x6a   :  { %366 = vmatmul.mubr.f32.gmra.mxu1 %v2748_v34  ;;  %506 = vmatprep.subr.mxu1 %v457_v35  ;;  %v2856_v35 = vld [vmem:[%s4172_s0 + $0x1d0] sm:$0xff] }
  0x6b   :  { %507 = vmatpush2.msra.mxu1 %v456_v37  ;;  %371 = vmatprep.mubr.f32.mxu1 %v2759_v39  ;;  %v445_v37 = vld [vmem:[%s4173_s2 + $0x158] sm:$0xff] }
  0x6c   :  { %508 = vmatprep.subr.mxu1 %v455_v42  ;;  %264 = vmatmul.mubr.f32.gmra.mxu0 %v2769_v43  ;;  %v444_v42 = vld [vmem:[%s4173_s2 + $0x150] sm:$0xff] }
  0x6d   :  { %509 = vmatpush2.msra.mxu1 %v454_v45  ;;  %269 = vmatprep.mubr.f32.mxu0 %v2778_v47  ;;  %v2867_v45 = vld [vmem:[%s4172_s0 + $0x1e8] sm:$0xff] }
  0x6e   :  { %372 = vmatmul.mubr.f32.gmra.mxu1 %v2784_v50  ;;  %510 = vmatprep.subr.mxu1 %v453_v51  ;;  %4179 = vst [vmem:[#allocation2_spill] sm:$0xff] %v2867_v45  ;;  %v443_v51 = vld [vmem:[%s4173_s2 + $0x148] sm:$0xff] }
  0x6f   :  { %511 = vmatpush2.msra.mxu1 %v452_v53  ;;  %377 = vmatprep.mubr.f32.mxu1 %v2795_v55  ;;  %v2877_v53 = vld [vmem:[%s4172_s0 + $0xc0] sm:$0xff] }
  0x70   :  { %512 = vmatprep.subr.mxu1 %v451_v58  ;;  %270 = vmatmul.mubr.f32.gmra.mxu0 %v2805_v59  ;;  %v442_v58 = vld [vmem:[%s4173_s2 + $0x140] sm:$0xff] }
  0x71   :  { %513 = vmatpush2.msra.mxu1 %v450_v61  ;;  %275 = vmatprep.mubr.f32.mxu0 %v2814_v63  ;;  %v2886_v61 = vld [vmem:[%s4172_s0 + $0xd8] sm:$0xff] }
  0x72   :  { %378 = vmatmul.mubr.f32.gmra.mxu1 %v2820_v3  ;;  %514 = vmatprep.subr.mxu1 %v449_v5  ;;  %v2892_v5 = vld [vmem:[%s4172_s0 + $0x1e0] sm:$0xff] }
  0x73   :  { %515 = vmatpush2.msra.mxu1 %v448_v9  ;;  %383 = vmatprep.mubr.f32.mxu1 %v2831_v12  ;;  %4180 = vst [vmem:[#allocation3_spill] sm:$0xff] %v2892_v5  ;;  %v441_v9 = vld [vmem:[%s4173_s2 + $0x138] sm:$0xff] }
  0x74   :  { %516 = vmatprep.subr.mxu1 %v447_v18  ;;  %276 = vmatmul.mubr.f32.gmra.mxu0 %v2841_v20  ;;  %v440_v18 = vld [vmem:[%s4173_s2 + $0x130] sm:$0xff] }
  0x75   :  { %517 = vmatpush2.msra.mxu1 %v446_v26  ;;  %281 = vmatprep.mubr.f32.mxu0 %v2850_v29  ;;  %v2903_v26 = vld [vmem:[%s4172_s0 + $0x1f8] sm:$0xff] }
  0x76   :  { %384 = vmatmul.mubr.f32.gmra.mxu1 %v2856_v35  ;;  %518 = vmatprep.subr.mxu1 %v445_v37  ;;  %4181 = vst [vmem:[#allocation4_spill] sm:$0xff] %v2903_v26  ;;  %v439_v37 = vld [vmem:[%s4173_s2 + $0x128] sm:$0xff] }
  0x77   :  { %519 = vmatpush2.msra.mxu1 %v444_v42  ;;  %389 = vmatprep.mubr.f32.mxu1 %v2867_v45  ;;  %v2913_v42 = vld [vmem:[%s4172_s0 + $0xd0] sm:$0xff] }
  0x78   :  { %520 = vmatprep.subr.mxu1 %v443_v51  ;;  %282 = vmatmul.mubr.f32.gmra.mxu0 %v2877_v53  ;;  %v438_v51 = vld [vmem:[%s4173_s2 + $0x120] sm:$0xff]  ;;  %v2928_v45 = vld [vmem:[%s4172_s0 + $0x1f0] sm:$0xff] }
  0x79   :  { %521 = vmatpush2.msra.mxu1 %v442_v58  ;;  %287 = vmatprep.mubr.f32.mxu0 %v2886_v61  ;;  %v2922_v58 = vld [vmem:[%s4172_s0 + $0xe8] sm:$0xff] }
  0x7a   :  { %390 = vmatmul.mubr.f32.gmra.mxu1 %v2892_v5  ;;  %522 = vmatprep.subr.mxu1 %v441_v9  ;;  %v437_v9 = vld [vmem:[%s4173_s2 + $0x118] sm:$0xff]  ;;  %v436_v5 = vld [vmem:[%s4173_s2 + $0x110] sm:$0xff] }
  0x7b   :  { %523 = vmatpush2.msra.mxu1 %v440_v18  ;;  %395 = vmatprep.mubr.f32.mxu1 %v2903_v26  ;;  %v435_v18 = vld [vmem:[%s4173_s2 + $0x108] sm:$0xff]  ;;  %v2944_v26 = vld [vmem:[%s4172_s0 + $0xe0] sm:$0xff] }
  0x7c   :  { %524 = vmatprep.subr.mxu1 %v439_v37  ;;  %288 = vmatmul.mubr.f32.gmra.mxu0 %v2913_v42  ;;  %v434_v37 = vld [vmem:[%s4173_s2 + $0x100] sm:$0xff] }
  0x7d   :  { %525 = vmatpush2.msra.mxu1 %v438_v51  ;;  %293 = vmatprep.mubr.f32.mxu0 %v2922_v58  ;;  %v2953_v51 = vld [vmem:[%s4172_s0 + $0xf8] sm:$0xff] }
  0x7e   :  { %396 = vmatmul.mubr.f32.gmra.mxu1 %v2928_v45  ;;  %526 = vmatprep.subr.mxu1 %v437_v9  ;;  %v2961_v9 = vld [vmem:[%s4172_s0 + $0xf0] sm:$0xff] }
  0x7f   :  { %527 = vmatpush2.msra.mxu1 %v436_v5  ;;  %530 = vmatprep.mubr.f32.mxu1 %v2419_v7  ;;  %v2169_v7 = vmov 0.0  }
  0x80   :  { %528 = vmatprep.subr.mxu1 %v435_v18  ;;  %294 = vmatmul.mubr.f32.gmra.mxu0 %v2944_v26 }
  0x81   :  { %529 = vmatpush2.msra.mxu1 %v434_v37  ;;  %299 = vmatprep.mubr.f32.mxu0 %v2953_v51 }
  0x82   :  { %531 = vmatmul.mubr.f32.vlgmr.msra.gmra.mxu1 %v2445_v13  ;;  %1395 = vmatprep.subr.mxu0 %v2169_v7  ;;  %v1378_v13 = vld [vmem:[%s4174_s3 + $0x78] sm:$0xff] }
  0x83   :  { %536 = vmatprep.mubr.f32.mxu1 %v2454_v15  ;;  %1396 = vmatpush1.msra.mxu0 %v1378_v13  ;;  %v1377_v15 = vld [vmem:[%s4174_s3 + $0x70] sm:$0xff] }
  0x84   :  { %300 = vmatmul.mubr.f32.gmra.mxu0 %v2961_v9  ;;  %1397 = vmatprep.subr.mxu0 %v2169_v7 }
  0x85   :  { %1398 = vmatpush1.msra.mxu0 %v1377_v15 }
  0x86   :  { %537 = vmatmul.mubr.f32.gmra.mxu1 %v2481_v21  ;;  %1399 = vmatprep.subr.mxu0 %v2169_v7  ;;  %v1376_v21 = vld [vmem:[%s4174_s3 + $0x68] sm:$0xff] }
  0x87   :  { %542 = vmatprep.mubr.f32.mxu1 %v2490_v23  ;;  %1400 = vmatpush1.msra.mxu0 %v1376_v21  ;;  %v1375_v23 = vld [vmem:[%s4174_s3 + $0x60] sm:$0xff] }
  0x88   :  { %1401 = vmatprep.subr.mxu0 %v2169_v7 }
  0x89   :  { %1402 = vmatpush1.msra.mxu0 %v1375_v23 }
  0x8a   :  { %543 = vmatmul.mubr.f32.gmra.mxu1 %v2517_v30  ;;  %1403 = vmatprep.subr.mxu0 %v2169_v7  ;;  %v1374_v30 = vld [vmem:[%s4174_s3 + $0x58] sm:$0xff] }
  0x8b   :  { %548 = vmatprep.mubr.f32.mxu1 %v2526_v32  ;;  %1404 = vmatpush1.msra.mxu0 %v1374_v30  ;;  %v1373_v32 = vld [vmem:[%s4174_s3 + $0x50] sm:$0xff] }
  0x8c   :  { %1405 = vmatprep.subr.mxu0 %v2169_v7 }
  0x8d   :  { %1406 = vmatpush1.msra.mxu0 %v1373_v32 }
  0x8e   :  { %549 = vmatmul.mubr.f32.gmra.mxu1 %v2553_v38  ;;  %1407 = vmatprep.subr.mxu0 %v2169_v7  ;;  %v1372_v38 = vld [vmem:[%s4174_s3 + $0x48] sm:$0xff] }
  0x8f   :  { %554 = vmatprep.mubr.f32.mxu1 %v2562_v40  ;;  %1408 = vmatpush1.msra.mxu0 %v1372_v38  ;;  %v1371_v40 = vld [vmem:[%s4174_s3 + $0x40] sm:$0xff] }
  0x90   :  { %1409 = vmatprep.subr.mxu0 %v2169_v7 }
  0x91   :  { %1410 = vmatpush1.msra.mxu0 %v1371_v40 }
  0x92   :  { %555 = vmatmul.mubr.f32.gmra.mxu1 %v2589_v46  ;;  %1411 = vmatprep.subr.mxu0 %v2169_v7  ;;  %v1370_v46 = vld [vmem:[%s4174_s3 + $0x38] sm:$0xff] }
  0x93   :  { %560 = vmatprep.mubr.f32.mxu1 %v2598_v48  ;;  %1412 = vmatpush1.msra.mxu0 %v1370_v46  ;;  %v1369_v48 = vld [vmem:[%s4174_s3 + $0x30] sm:$0xff] }
  0x94   :  { %1413 = vmatprep.subr.mxu0 %v2169_v7 }
  0x95   :  { %1414 = vmatpush1.msra.mxu0 %v1369_v48 }
  0x96   :  { %561 = vmatmul.mubr.f32.gmra.mxu1 %v2625_v54  ;;  %1415 = vmatprep.subr.mxu0 %v2169_v7  ;;  %v1368_v54 = vld [vmem:[%s4174_s3 + $0x28] sm:$0xff] }
  0x97   :  { %566 = vmatprep.mubr.f32.mxu1 %v2634_v56  ;;  %1416 = vmatpush1.msra.mxu0 %v1368_v54  ;;  %v1367_v56 = vld [vmem:[%s4174_s3 + $0x20] sm:$0xff] }
  0x98   :  { %1417 = vmatprep.subr.mxu0 %v2169_v7 }
  0x99   :  { %1418 = vmatpush1.msra.mxu0 %v1367_v56 }
  0x9a   :  { %567 = vmatmul.mubr.f32.gmra.mxu1 %v2661_v62  ;;  %1419 = vmatprep.subr.mxu0 %v2169_v7  ;;  %v1366_v62 = vld [vmem:[%s4174_s3 + $0x18] sm:$0xff] }
  0x9b   :  { %572 = vmatprep.mubr.f32.mxu1 %v2670_v0  ;;  %1420 = vmatpush1.msra.mxu0 %v1366_v62  ;;  %v1365_v0 = vld [vmem:[%s4174_s3 + $0x10] sm:$0xff] }
  0x9c   :  { %1421 = vmatprep.subr.mxu0 %v2169_v7 }
  0x9d   :  { %1422 = vmatpush1.msra.mxu0 %v1365_v0 }
  0x9e   :  { %573 = vmatmul.mubr.f32.gmra.mxu1 %v2697_v10  ;;  %1423 = vmatprep.subr.mxu0 %v2169_v7  ;;  %v1364_v10 = vld [vmem:[%s4174_s3 + $0x8] sm:$0xff] }
  0x9f   :  { %578 = vmatprep.mubr.f32.mxu1 %v2706_v14  ;;  %1424 = vmatpush1.msra.mxu0 %v1364_v10  ;;  %v1363_v14 = vld [vmem:[%s4174_s3] sm:$0xff] }
  0xa0   :  { %1425 = vmatprep.subr.mxu0 %v2169_v7 }
  0xa1   :  { %1426 = vmatpush1.msra.mxu0 %v1363_v14 }
  0xa2   :  { %579 = vmatmul.mubr.f32.gmra.mxu1 %v2733_v27  ;;  %1427 = vmatprep.subr.mxu0 %v2169_v7  ;;  %v1394_v27 = vld [vmem:[%s4174_s3 + $0xf8] sm:$0xff] }
  0xa3   :  { %584 = vmatprep.mubr.f32.mxu1 %v2742_v31  ;;  %1428 = vmatpush2.msra.mxu0 %v1394_v27  ;;  %v1393_v31 = vld [vmem:[%s4174_s3 + $0xf0] sm:$0xff] }
  0xa4   :  { %1429 = vmatprep.subr.mxu0 %v2169_v7 }
  0xa5   :  { %1430 = vmatpush2.msra.mxu0 %v1393_v31 }
  0xa6   :  { %585 = vmatmul.mubr.f32.gmra.mxu1 %v2769_v43  ;;  %1431 = vmatprep.subr.mxu0 %v2169_v7  ;;  %v1392_v43 = vld [vmem:[%s4174_s3 + $0xe8] sm:$0xff] }
  0xa7   :  { %590 = vmatprep.mubr.f32.mxu1 %v2778_v47  ;;  %1432 = vmatpush2.msra.mxu0 %v1392_v43  ;;  %v1391_v47 = vld [vmem:[%s4174_s3 + $0xe0] sm:$0xff] }
  0xa8   :  { %1433 = vmatprep.subr.mxu0 %v2169_v7 }
  0xa9   :  { %1434 = vmatpush2.msra.mxu0 %v1391_v47 }
  0xaa   :  { %591 = vmatmul.mubr.f32.gmra.mxu1 %v2805_v59  ;;  %1435 = vmatprep.subr.mxu0 %v2169_v7 }
  0xab   :  { %596 = vmatprep.mubr.f32.mxu1 %v2814_v63 }
  0xae   :  { %597 = vmatmul.mubr.f32.gmra.mxu1 %v2841_v20 }
  0xaf   :  { %602 = vmatprep.mubr.f32.mxu1 %v2850_v29 }
  0xb2   :  { %603 = vmatmul.mubr.f32.gmra.mxu1 %v2877_v53 }
  0xb3   :  { %608 = vmatprep.mubr.f32.mxu1 %v2886_v61 }
  0xb6   :  { %609 = vmatmul.mubr.f32.gmra.mxu1 %v2913_v42 }
  0xb7   :  { %614 = vmatprep.mubr.f32.mxu1 %v2922_v58 }
  0xba   :  { %615 = vmatmul.mubr.f32.gmra.mxu1 %v2944_v26 }
  0xbb   :  { %620 = vmatprep.mubr.f32.mxu1 %v2953_v51 }
  0xbe   :  { %621 = vmatmul.mubr.f32.gmra.mxu1 %v2961_v9 }
  0xbf   :  { %626 = vmatprep.mubr.f32.mxu1 %v2270_v24  ;;  %v1390_v24 = vld [vmem:[%s4174_s3 + $0xd8] sm:$0xff] }
  0xc0   :  { %1436 = vmatpush2.msra.mxu0 %v1390_v24 }
  0xc1   :  { %1437 = vmatprep.subr.mxu0 %v2169_v7 }
  0xc2   :  { %627 = vmatmul.mubr.f32.gmra.mxu1 %v2396_v1  ;;  %v1389_v1 = vld [vmem:[%s4174_s3 + $0xd0] sm:$0xff] }
  0xc3   :  { %632 = vmatprep.mubr.f32.mxu1 %v2407_v4  ;;  %1438 = vmatpush2.msra.mxu0 %v1389_v1  ;;  %v1388_v4 = vld [vmem:[%s4174_s3 + $0xc8] sm:$0xff] }
  0xc4   :  { %1439 = vmatprep.subr.mxu0 %v2169_v7 }
  0xc5   :  { %1440 = vmatpush2.msra.mxu0 %v1388_v4 }
  0xc6   :  { %633 = vmatmul.mubr.f32.gmra.mxu1 %v2425_v8  ;;  %1441 = vmatprep.subr.mxu0 %v2169_v7  ;;  %v1387_v8 = vld [vmem:[%s4174_s3 + $0xc0] sm:$0xff] }
  0xc7   :  { %638 = vmatprep.mubr.f32.mxu1 %v2436_v11  ;;  %1442 = vmatpush2.msra.mxu0 %v1387_v8  ;;  %v1386_v11 = vld [vmem:[%s4174_s3 + $0xb8] sm:$0xff] }
  0xc8   :  { %1443 = vmatprep.subr.mxu0 %v2169_v7 }
  0xc9   :  { %1444 = vmatpush2.msra.mxu0 %v1386_v11 }
  0xca   :  { %639 = vmatmul.mubr.f32.gmra.mxu1 %v2460_v16  ;;  %1445 = vmatprep.subr.mxu0 %v2169_v7  ;;  %v1385_v16 = vld [vmem:[%s4174_s3 + $0xb0] sm:$0xff] }
  0xcb   :  { %644 = vmatprep.mubr.f32.mxu1 %v2471_v19  ;;  %1446 = vmatpush2.msra.mxu0 %v1385_v16  ;;  %v1384_v19 = vld [vmem:[%s4174_s3 + $0xa8] sm:$0xff] }
  0xcc   :  { %1447 = vmatprep.subr.mxu0 %v2169_v7 }
  0xcd   :  { %1448 = vmatpush2.msra.mxu0 %v1384_v19 }
  0xce   :  { %645 = vmatmul.mubr.f32.gmra.mxu1 %v2496_v25  ;;  %1449 = vmatprep.subr.mxu0 %v2169_v7  ;;  %v1383_v25 = vld [vmem:[%s4174_s3 + $0xa0] sm:$0xff] }
  0xcf   :  { %650 = vmatprep.mubr.f32.mxu1 %v2507_v28  ;;  %1450 = vmatpush2.msra.mxu0 %v1383_v25  ;;  %v1382_v28 = vld [vmem:[%s4174_s3 + $0x98] sm:$0xff] }
  0xd0   :  { %1451 = vmatprep.subr.mxu0 %v2169_v7 }
  0xd1   :  { %1452 = vmatpush2.msra.mxu0 %v1382_v28 }
  0xd2   :  { %651 = vmatmul.mubr.f32.gmra.mxu1 %v2532_v33  ;;  %1453 = vmatprep.subr.mxu0 %v2169_v7  ;;  %v1381_v33 = vld [vmem:[%s4174_s3 + $0x90] sm:$0xff] }
  0xd3   :  { %656 = vmatprep.mubr.f32.mxu1 %v2543_v36  ;;  %1454 = vmatpush2.msra.mxu0 %v1381_v33  ;;  %v1380_v36 = vld [vmem:[%s4174_s3 + $0x88] sm:$0xff] }
  0xd4   :  { %1455 = vmatprep.subr.mxu0 %v2169_v7 }
  0xd5   :  { %1456 = vmatpush2.msra.mxu0 %v1380_v36 }
  0xd6   :  { %657 = vmatmul.mubr.f32.gmra.mxu1 %v2568_v41  ;;  %1457 = vmatprep.subr.mxu0 %v2169_v7  ;;  %v1379_v41 = vld [vmem:[%s4174_s3 + $0x80] sm:$0xff] }
  0xd7   :  { %662 = vmatprep.mubr.f32.mxu1 %v2579_v44  ;;  %1458 = vmatpush2.msra.mxu0 %v1379_v41  ;;  %v4182_v44 = vld [vmem:[#allocation2_spill] sm:$0xff] }
  0xda   :  { %663 = vmatmul.mubr.f32.gmra.mxu1 %v2604_v49  ;;  %v4183_v49 = vld [vmem:[#allocation3_spill] sm:$0xff] }
  0xdb   :  { %668 = vmatprep.mubr.f32.mxu1 %v2615_v52  ;;  %v4184_v52 = vld [vmem:[#allocation4_spill] sm:$0xff] }
  0xde   :  { %669 = vmatmul.mubr.f32.gmra.mxu1 %v2640_v57 }
  0xdf   :  { %674 = vmatprep.mubr.f32.mxu1 %v2651_v60 }
  0xe2   :  { %675 = vmatmul.mubr.f32.gmra.mxu1 %v2676_v2 }
  0xe3   :  { %680 = vmatprep.mubr.f32.mxu1 %v2687_v6 }
  0xe6   :  { %681 = vmatmul.mubr.f32.gmra.mxu1 %v2712_v17 }
  0xe7   :  { %686 = vmatprep.mubr.f32.mxu1 %v2723_v22 }
  0xea   :  { %687 = vmatmul.mubr.f32.gmra.mxu1 %v2748_v34 }
  0xeb   :  { %692 = vmatprep.mubr.f32.mxu1 %v2759_v39 }
  0xee   :  { %693 = vmatmul.mubr.f32.gmra.mxu1 %v2784_v50 }
  0xef   :  { %698 = vmatprep.mubr.f32.mxu1 %v2795_v55 }
  0xf2   :  { %699 = vmatmul.mubr.f32.gmra.mxu1 %v2820_v3 }
  0xf3   :  { %704 = vmatprep.mubr.f32.mxu1 %v2831_v12 }
  0xf6   :  { %705 = vmatmul.mubr.f32.gmra.mxu1 %v2856_v35 }
  0xf7   :  { %710 = vmatprep.mubr.f32.mxu1 %v4182_v44 }
  0xfa   :  { %711 = vmatmul.mubr.f32.gmra.mxu1 %v4183_v49 }
  0xfb   :  { %716 = vmatprep.mubr.f32.mxu1 %v4184_v52 }
  0xfe   :  { %717 = vmatmul.mubr.f32.gmra.mxu1 %v2928_v45 }
 0x102   :  { %v307_v57 = vpop.f32.mrf.mxu1 }
 0x103   :  { %v3213_v28 = vmul.f32 %v307_v57, %v307_v57 }
 0x104   :  { %v309_v60 = vpop.f32.mrf.mxu1 }
 0x105   :  { %v3215_v33 = vmul.f32 %v309_v60, %v309_v60 }
 0x106   :  { %v313_v2 = vpop.f32.mrf.mxu1 }
 0x107   :  { %v3217_v36 = vmul.f32 %v313_v2, %v313_v2 }
 0x108   :  { %v315_v6 = vpop.f32.mrf.mxu1  ;;  %v211_v17 = vpop.f32.mrf.mxu0 }
 0x109   :  { %v3219_v41 = vmul.f32 %v315_v6, %v315_v6  ;;  %v723_v52 = vmul.f32 %v211_v17, %v211_v17 }
 0x10a   :  { %v319_v22 = vpop.f32.mrf.mxu1  ;;  %v213_v34 = vpop.f32.mrf.mxu0 }
 0x10b   :  { %4190 = vst [vmem:[#allocation7_spill] sm:$0xff] %v3219_v41  ;;  %v3221_v44 = vmul.f32 %v319_v22, %v319_v22 }
 0x10c   :  { %v321_v39 = vpop.f32.mrf.mxu1  ;;  %v217_v50 = vpop.f32.mrf.mxu0 }
 0x10d   :  { %4191 = vst [vmem:[#allocation8_spill] sm:$0xff] %v3221_v44 }
 0x10e   :  { %v325_v55 = vpop.f32.mrf.mxu1  ;;  %v219_v59 = vpop.f32.mrf.mxu0 }
 0x110   :  { %v327_v63 = vpop.f32.mrf.mxu1  ;;  %v223_v3 = vpop.f32.mrf.mxu0 }
 0x111   :  { %v3229_v57 = vmul.f32 %v327_v63, %v327_v63  ;;  %v727_v6 = vmul.f32 %v223_v3, %v223_v3 }
 0x112   :  { %v331_v12 = vpop.f32.mrf.mxu1  ;;  %v225_v20 = vpop.f32.mrf.mxu0 }
 0x113   :  { %v3231_v60 = vmul.f32 %v331_v12, %v331_v12  ;;  %v3235_v41 = vmul.f32 %v225_v20, %v225_v20 }
 0x114   :  { %v333_v29 = vpop.f32.mrf.mxu1  ;;  %v229_v35 = vpop.f32.mrf.mxu0 }
 0x115   :  { %v3239_v44 = vmul.f32 %v333_v29, %v333_v29 }
 0x116   :  { %v337_v53 = vpop.f32.mrf.mxu1  ;;  %v231_v61 = vpop.f32.mrf.mxu0 }
 0x117   :  { %v3241_v17 = vmul.f32 %v337_v53, %v337_v53 }
 0x118   :  { %v339_v45 = vpop.f32.mrf.mxu1  ;;  %v235_v5 = vpop.f32.mrf.mxu0 }
 0x119   :  { %v3251_v63 = vmul.f32 %v235_v5, %v235_v5 }
 0x11a   :  { %v343_v26 = vpop.f32.mrf.mxu1  ;;  %v237_v42 = vpop.f32.mrf.mxu0 }
 0x11b   :  { %v3253_v3 = vmul.f32 %v237_v42, %v237_v42 }
 0x11c   :  { %v345_v58 = vpop.f32.mrf.mxu1  ;;  %v3155_v18 = vpop.f32.mrf.mxu0 }
 0x11d   :  { %v3255_v12 = vmul.f32 %v345_v58, %v345_v58 }
 0x11e   :  { %v349_v37 = vpop.f32.mrf.mxu1  ;;  %v3157_v51 = vpop.f32.mrf.mxu0 }
 0x11f   :  { %v3257_v20 = vmul.f32 %v349_v37, %v349_v37  ;;  %v3269_v5 = vmul.f32 %v3157_v51, %v3157_v51 }
 0x120   :  { %v351_v9 = vpop.f32.mrf.mxu1  ;;  %v3159_v7 = vpop.f32.mrf.mxu0 }
 0x121   :  { %4192 = vst [vmem:[#allocation9_spill] sm:$0xff] %v3257_v20  ;;  %v3263_v53 = vmul.f32 %v351_v9, %v351_v9 }
 0x122   :  { %v355_v13 = vpop.f32.mrf.mxu1  ;;  %v3161_v15 = vpop.f32.mrf.mxu0 }
 0x123   :  { %4193 = vst [vmem:[#allocation10_spill] sm:$0xff] %v3263_v53  ;;  %v3281_v9 = vmul.f32 %v3161_v15, %v3161_v15 }
 0x124   :  { %v357_v21 = vpop.f32.mrf.mxu1  ;;  %v3163_v23 = vpop.f32.mrf.mxu0 }
 0x125   :  { %v3275_v58 = vmul.f32 %v357_v21, %v357_v21  ;;  %v3293_v21 = vmul.f32 %v3163_v23, %v3163_v23 }
 0x126   :  { %v3165_v30 = vpop.f32.mrf.mxu1  ;;  %v3167_v32 = vpop.f32.mrf.mxu0 }
 0x127   :  { %4195 = vst [vmem:[#allocation12_spill] sm:$0xff] %v3275_v58 }
 0x128   :  { %v3169_v38 = vpop.f32.mrf.mxu1  ;;  %v3171_v40 = vpop.f32.mrf.mxu0 }
 0x129   :  { %v3289_v51 = vmul.f32 %v3169_v38, %v3169_v38 }
 0x12a   :  { %v3173_v46 = vpop.f32.mrf.mxu1  ;;  %v3175_v48 = vpop.f32.mrf.mxu0 }
 0x12b   :  { %4197 = vst [vmem:[#allocation14_spill] sm:$0xff] %v3289_v51  ;;  %v3308_v38 = vmul.f32 %v3173_v46, %v3173_v46 }
 0x12c   :  { %v3177_v54 = vpop.f32.mrf.mxu1  ;;  %v3179_v56 = vpop.f32.mrf.mxu0 }
 0x12d   :  { %4198 = vst [vmem:[#allocation15_spill] sm:$0xff] %v3308_v38  ;;  %v3312_v23 = vmul.f32 %v3177_v54, %v3177_v54 }
 0x12e   :  { %v3181_v62 = vpop.f32.mrf.mxu1  ;;  %v3183_v0 = vpop.f32.mrf.mxu0 }
 0x12f   :  { %4199 = vst [vmem:[#allocation16_spill] sm:$0xff] %v3312_v23 }
 0x130   :  { %v3185_v10 = vpop.f32.mrf.mxu1  ;;  %v3187_v14 = vpop.f32.mrf.mxu0 }
 0x132   :  { %v3189_v27 = vpop.f32.mrf.mxu1  ;;  %v3191_v31 = vpop.f32.mrf.mxu0 }
 0x134   :  { %v3193_v43 = vpop.f32.mrf.mxu1  ;;  %v3195_v47 = vpop.f32.mrf.mxu0 }
 0x136   :  { %v3197_v24 = vpop.f32.mrf.mxu1  ;;  %v3199_v1 = vpop.f32.mrf.mxu0 }
 0x138   :  { %v3201_v4 = vpop.f32.mrf.mxu1  ;;  %v3203_v8 = vpop.f32.mrf.mxu0 }
 0x139   :  { %4185 = vst [vmem:[#allocation2_spill] sm:$0xff] %v3203_v8  ;;  %v724_v8 = vmul.f32 %v213_v34, %v213_v34  ;;  %v3243_v34 = vmul.f32 %v229_v35, %v229_v35  ;;  %v3261_v35 = vmul.f32 %v3155_v18, %v3155_v18 }
 0x13a   :  { %v3205_v11 = vpop.f32.mrf.mxu1  ;;  %v3207_v16 = vpop.f32.mrf.mxu0 }
 0x13b   :  { %4186 = vst [vmem:[#allocation3_spill] sm:$0xff] %v3205_v11  ;;  %4187 = vst [vmem:[#allocation4_spill] sm:$0xff] %v3207_v16  ;;  %v3225_v11 = vmul.f32 %v321_v39, %v321_v39  ;;  %v3227_v16 = vmul.f32 %v325_v55, %v325_v55  ;;  %v3245_v39 = vmul.f32 %v231_v61, %v231_v61 }
 0x13c   :  { %v3209_v19 = vpop.f32.mrf.mxu1  ;;  %v3211_v25 = vpop.f32.mrf.mxu0  ;;  %v3249_v55 = vmul.f32 %v343_v26, %v343_v26  ;;  %v3265_v61 = vmul.f32 %v355_v13, %v355_v13  ;;  %v3273_v26 = vmul.f32 %v3159_v7, %v3159_v7  ;;  %v3285_v13 = vmul.f32 %v3165_v30, %v3165_v30 }
 0x13d   :  { %4188 = vst [vmem:[#allocation5_spill] sm:$0xff] %v3209_v19  ;;  %4189 = vst [vmem:[#allocation6_spill] sm:$0xff] %v3211_v25  ;;  %v725_v19 = vmul.f32 %v217_v50, %v217_v50  ;;  %v726_v25 = vmul.f32 %v219_v59, %v219_v59  ;;  %v3247_v50 = vmul.f32 %v339_v45, %v339_v45 }
 0x13e   :  { %v3223_v49 = vpop.f32.mrf.mxu1  ;;  %v3237_v22 = vpop.f32.mrf.mxu0  ;;  %4194 = vst [vmem:[#allocation11_spill] sm:$0xff] %v3265_v61  ;;  %4196 = vst [vmem:[#allocation13_spill] sm:$0xff] %v3285_v13  ;;  %v3304_v30 = vmul.f32 %v3171_v40, %v3171_v40  ;;  %v3324_v40 = vmul.f32 %v3181_v62, %v3181_v62  ;;  %v3343_v62 = vmul.f32 %v3187_v14, %v3187_v14 }
 0x13f   :  { %v3362_v14 = vmul.f32 %v3195_v47, %v3195_v47 }
 0x140   :  { %v3233_v2 = vpop.f32.mrf.mxu1  ;;  %v295_v42 = vpop.f32.mrf.mxu0  ;;  %4200 = vst [vmem:[#allocation17_spill] sm:$0xff] %v3324_v40 }
 0x142   :  { %v532_v59 = vpop.f32.mrf.mxu1 }
 0x143   :  { %v787_v29 = vmul.f32 %v532_v59, %v532_v59 }
 0x144   :  { %v534_v45 = vpop.f32.mrf.mxu1  ;;  %v4208_v47 = vld [vmem:[#allocation5_spill] sm:$0xff] }
 0x145   :  { %v3277_v37 = vadd.f32 %v787_v29, %v723_v52  ;;  %v788_v18 = vmul.f32 %v534_v45, %v534_v45  ;;  %v3297_v52 = vmul.f32 %v3167_v32, %v3167_v32  ;;  %v3316_v32 = vmul.f32 %v3175_v48, %v3175_v48  ;;  %v297_v45 = vpop.f32.mrf.mxu0 }
 0x146   :  { %v538_v7 = vpop.f32.mrf.mxu1  ;;  %v3335_v48 = vmul.f32 %v3189_v27, %v3189_v27  ;;  %v3354_v27 = vmul.f32 %v3193_v43, %v3193_v43 }
 0x147   :  { %1977 = vrsqrt.f32 %v3277_v37  ;;  %v3300_v15 = vadd.f32 %v788_v18, %v724_v8  ;;  %v789_v59 = vmul.f32 %v538_v7, %v538_v7  ;;  %v3320_v8 = vmul.f32 %v3179_v56, %v3179_v56 }
 0x148   :  { %v540_v29 = vpop.f32.mrf.mxu1  ;;  %v3331_v18 = vmul.f32 %v3185_v10, %v3185_v10  ;;  %4202 = vst [vmem:[#allocation19_spill] sm:$0xff] %v3335_v48  ;;  %v3339_v7 = vmul.f32 %v3183_v0, %v3183_v0  ;;  %v3350_v10 = vmul.f32 %v3191_v31, %v3191_v31  ;;  %4203 = vst [vmem:[#allocation20_spill] sm:$0xff] %v3354_v27  ;;  %v4210_v48 = vld [vmem:[#allocation2_spill] sm:$0xff]  ;;  %vm917_vm0 = vcmp.eq.f32.partialorder %v3277_v37, inf }
 0x149   :  { %1979 = vrsqrt.f32 %v3300_v15  ;;  %v3327_v46 = vadd.f32 %v789_v59, %v725_v19  ;;  %v790_v54 = vmul.f32 %v540_v29, %v540_v29  ;;  %v3358_v0 = vmul.f32 %v3197_v24, %v3197_v24 }
 0x14a   :  { %4201 = vst [vmem:[#allocation18_spill] sm:$0xff] %v3331_v18  ;;  %v544_v56 = vpop.f32.mrf.mxu1  ;;  %v3370_v31 = vmul.f32 %v3201_v4, %v3201_v4  ;;  %v3381_v27 = vmul.f32 %v4208_v47, %v4208_v47  ;;  %v3385_v18 = vmul.f32 %v4210_v48, %v4210_v48  ;;  %v4211_v4 = vld [vmem:[#allocation4_spill] sm:$0xff]  ;;  %v3401_v47 = vmul.f32 %v3223_v49, %v3223_v49 }
 0x14b   :  { %1981 = vrsqrt.f32 %v3327_v46  ;;  %v3346_v19 = vadd.f32 %v790_v54, %v726_v25  ;;  %v791_v59 = vmul.f32 %v544_v56, %v544_v56  ;;  %4204 = vst [vmem:[#allocation21_spill] sm:$0xff] %v3358_v0  ;;  %v3366_v25 = vmul.f32 %v3199_v1, %v3199_v1  ;;  %v301_v54 = vpop.f32.mrf.mxu0  ;;  %v4206_v56 = vld [vmem:[#allocation3_spill] sm:$0xff] }
 0x14c   :  { %v546_v29 = vpop.f32.mrf.mxu1  ;;  %4205 = vst [vmem:[#allocation22_spill] sm:$0xff] %v3370_v31  ;;  %v3377_v0 = vmul.f32 %v4206_v56, %v4206_v56  ;;  %4209 = vst [vmem:[#allocation5_spill] sm:$0xff] %v3381_v27  ;;  %v3389_v31 = vmul.f32 %v4211_v4, %v4211_v4  ;;  %v3405_v48 = vmul.f32 %v3233_v2, %v3233_v2  ;;  %vm919_vm1 = vcmp.eq.f32.partialorder %v3277_v37, 0.0 }
 0x14d   :  { %1983 = vrsqrt.f32 %v3346_v19  ;;  %v3373_v43 = vadd.f32 %v791_v59, %v727_v6  ;;  %v792_v24 = vmul.f32 %v546_v29, %v546_v29  ;;  %v4212_v29 = vld [vmem:[#allocation6_spill] sm:$0xff]  ;;  %4213 = vst [vmem:[#allocation2_spill] sm:$0xff] %v3401_v47  ;;  %v3409_v27 = vmul.f32 %v3237_v22, %v3237_v22 }
 0x14e   :  { %4207 = vst [vmem:[#allocation3_spill] sm:$0xff] %v3377_v0  ;;  %v550_v1 = vpop.f32.mrf.mxu1  ;;  %v3397_v56 = vmul.f32 %v4212_v29, %v4212_v29  ;;  %4214 = vst [vmem:[#allocation4_spill] sm:$0xff] %v3405_v48  ;;  %v3417_v49 = vmul.f32 %v297_v45, %v297_v45  ;;  %v920_v2 = vand.u32 2147483648, %v3277_v37  ;;  %v3422_v22 = vmul.f32 %v301_v54, %v301_v54 }
 0x14f   :  { %1985 = vrsqrt.f32 %v3373_v43  ;;  %v3393_v6 = vadd.f32 %v792_v24, %v3235_v41  ;;  %v793_v59 = vmul.f32 %v550_v1, %v550_v1  ;;  %v3411_v41 = vmul.f32 %v295_v42, %v295_v42  ;;  %v303_v24 = vpop.f32.mrf.mxu0 }
 0x150   :  { %v552_v4 = vpop.f32.mrf.mxu1  ;;  %vm924_vm2 = vcmp.eq.f32.partialorder %v3300_v15, inf  ;;  %vm926_vm3 = vcmp.eq.f32.partialorder %v3300_v15, 0.0  ;;  %vm931_vm4 = vcmp.eq.f32.partialorder %v3327_v46, inf  ;;  %vm933_vm5 = vcmp.eq.f32.partialorder %v3327_v46, 0.0 }
 0x151   :  { %1987 = vrsqrt.f32 %v3393_v6  ;;  %v3415_v1 = vadd.f32 %v793_v59, %v3243_v34  ;;  %v794_v29 = vmul.f32 %v552_v4, %v552_v4  ;;  %v3428_v34 = vmul.f32 %v303_v24, %v303_v24 }
 0x152   :  { %v556_v47 = vpop.f32.mrf.mxu1  ;;  %v927_v4 = vand.u32 2147483648, %v3300_v15  ;;  %vm938_vm6 = vcmp.eq.f32.partialorder %v3346_v19, inf  ;;  %vm940_vm7 = vcmp.eq.f32.partialorder %v3346_v19, 0.0  ;;  %v941_v0 = vand.u32 2147483648, %v3346_v19 }
 0x153   :  { %1989 = vrsqrt.f32 %v3415_v1  ;;  %v3426_v42 = vadd.f32 %v794_v29, %v3245_v39  ;;  %v795_v48 = vmul.f32 %v556_v47, %v556_v47  ;;  %v934_v40 = vand.u32 2147483648, %v3327_v46 }
 0x154   :  { %v1978_v59 = vpop.eup %1977  ;;  %v558_v45 = vpop.f32.mrf.mxu1  ;;  %vm952_vm8 = vcmp.eq.f32.partialorder %v3393_v6, inf  ;;  %vm945_vm9 = vcmp.eq.f32.partialorder %v3373_v43, inf  ;;  %v948_v51 = vand.u32 2147483648, %v3373_v43  ;;  %vm954_vm10 = vcmp.eq.f32.partialorder %v3393_v6, 0.0 }
 0x155   :  { %1991 = vrsqrt.f32 %v3426_v42  ;;  %v3436_v54 = vadd.f32 %v795_v48, %v3251_v63  ;;  %v796_v39 = vmul.f32 %v558_v45, %v558_v45  ;;  %v916_v47 = vmul.f32 %v1978_v59, %v3277_v37 }
 0x156   :  { %v1980_v24 = vpop.eup %1979  ;;  %v562_v29 = vpop.f32.mrf.mxu1  ;;  %vm947_vm11 = vcmp.eq.f32.partialorder %v3373_v43, 0.0  ;;  %vm966_vm12 = vcmp.eq.f32.partialorder %v3426_v42, inf  ;;  %vm959_vm13 = vcmp.eq.f32.partialorder %v3415_v1, inf  ;;  %vm968_vm14 = vcmp.eq.f32.partialorder %v3426_v42, 0.0 }
 0x157   :  { %1993 = vrsqrt.f32 %v3436_v54  ;;  %v3446_v63 = vadd.f32 %v796_v39, %v3253_v3  ;;  %v797_v48 = vmul.f32 %v562_v29, %v562_v29  ;;  %v923_v59 = vmul.f32 %v1980_v24, %v3300_v15 }
 0x158   :  { %v1982_v45 = vpop.eup %1981  ;;  %v564_v23 = vpop.f32.mrf.mxu1  ;;  %v918_v38 = vsel %vm917_vm0, %v3277_v37, %v916_v47  ;;  %vm961_vm15 = vcmp.eq.f32.partialorder %v3415_v1, 0.0 }
 0x159   :  { %1995 = vrsqrt.f32 %v3446_v63  ;;  %v3457_v3 = vadd.f32 %v797_v48, %v3261_v35  ;;  %v798_v39 = vmul.f32 %v564_v23, %v564_v23  ;;  %v925_v24 = vsel %vm924_vm2, %v3300_v15, %v923_v59 }
 0x15a   :  { %v1984_v47 = vpop.eup %1983  ;;  %v568_v29 = vpop.f32.mrf.mxu1  ;;  %v928_v13 = vsel %vm926_vm3, %v927_v4, %v925_v24  ;;  %v921_v58 = vsel %vm919_vm1, %v920_v2, %v918_v38  ;;  %v930_v35 = vmul.f32 %v1982_v45, %v3327_v46  ;;  %v955_v23 = vand.u32 2147483648, %v3393_v6 }
 0x15b   :  { %1997 = vrsqrt.f32 %v3457_v3  ;;  %v3472_v48 = vadd.f32 %v798_v39, %v3269_v5  ;;  %v799_v59 = vmul.f32 %v568_v29, %v568_v29  ;;  %1459 = vmatprep.mubr.f32.mxu0 %v928_v13  ;;  %v937_v61 = vmul.f32 %v1984_v47, %v3346_v19 }
 0x15c   :  { %v1986_v53 = vpop.eup %1985  ;;  %v570_v20 = vpop.f32.mrf.mxu1  ;;  %1460 = vmatmul.mubr.f32.vlgmr.msra.gmra.mxu0 %v921_v58  ;;  %v932_v37 = vsel %vm931_vm4, %v3327_v46, %v930_v35  ;;  %v962_v15 = vand.u32 2147483648, %v3415_v1  ;;  %vm980_vm0 = vcmp.eq.f32.partialorder %v3446_v63, inf  ;;  %vm973_vm1 = vcmp.eq.f32.partialorder %v3436_v54, inf }
 0x15d   :  { %1999 = vrsqrt.f32 %v3472_v48  ;;  %v3483_v5 = vadd.f32 %v799_v59, %v3273_v26  ;;  %v800_v13 = vmul.f32 %v570_v20, %v570_v20  ;;  %v939_v58 = vsel %vm938_vm6, %v3346_v19, %v937_v61 }
 0x15e   :  { %v1988_v38 = vpop.eup %1987  ;;  %v574_v2 = vpop.f32.mrf.mxu1  ;;  %v942_v4 = vsel %vm940_vm7, %v941_v0, %v939_v58  ;;  %v935_v45 = vsel %vm933_vm5, %v934_v40, %v932_v37  ;;  %v944_v26 = vmul.f32 %v1986_v53, %v3373_v43  ;;  %v969_v20 = vand.u32 2147483648, %v3426_v42 }
 0x15f   :  { %2001 = vrsqrt.f32 %v3483_v5  ;;  %v3498_v61 = vadd.f32 %v800_v13, %v3281_v9  ;;  %v801_v39 = vmul.f32 %v574_v2, %v574_v2  ;;  %1464 = vmatprep.mubr.f32.mxu0 %v942_v4  ;;  %v951_v24 = vmul.f32 %v1988_v38, %v3393_v6 }
 0x160   :  { %v1990_v47 = vpop.eup %1989  ;;  %v576_v29 = vpop.f32.mrf.mxu1  ;;  %1465 = vmatmul.mubr.f32.gmra.mxu0 %v935_v45  ;;  %v946_v40 = vsel %vm945_vm9, %v3373_v43, %v944_v26  ;;  %v976_v53 = vand.u32 2147483648, %v3436_v54  ;;  %vm982_vm2 = vcmp.eq.f32.partialorder %v3446_v63, 0.0  ;;  %vm975_vm3 = vcmp.eq.f32.partialorder %v3436_v54, 0.0 }
 0x161   :  { %2003 = vrsqrt.f32 %v3498_v61  ;;  %v3509_v9 = vadd.f32 %v801_v39, %v3293_v21  ;;  %v802_v46 = vmul.f32 %v576_v29, %v576_v29  ;;  %v953_v19 = vsel %vm952_vm8, %v3393_v6, %v951_v24 }
 0x162   :  { %v1992_v0 = vpop.eup %1991  ;;  %v580_v35 = vpop.f32.mrf.mxu1  ;;  %v956_v59 = vsel %vm954_vm10, %v955_v23, %v953_v19  ;;  %v949_v37 = vsel %vm947_vm11, %v948_v51, %v946_v40  ;;  %v958_v21 = vmul.f32 %v1990_v47, %v3415_v1  ;;  %v983_v13 = vand.u32 2147483648, %v3446_v63 }
 0x163   :  { %2005 = vrsqrt.f32 %v3509_v9  ;;  %v3524_v58 = vadd.f32 %v802_v46, %v3297_v52  ;;  %v803_v38 = vmul.f32 %v580_v35, %v580_v35  ;;  %1469 = vmatprep.mubr.f32.mxu0 %v956_v59  ;;  %v965_v2 = vmul.f32 %v1992_v0, %v3426_v42 }
 0x164   :  { %v1994_v4 = vpop.eup %1993  ;;  %v582_v45 = vpop.f32.mrf.mxu1  ;;  %1470 = vmatmul.mubr.f32.gmra.mxu0 %v949_v37  ;;  %v960_v51 = vsel %vm959_vm13, %v3415_v1, %v958_v21  ;;  %vm994_vm4 = vcmp.eq.f32.partialorder %v3472_v48, inf  ;;  %v997_v43 = vand.u32 2147483648, %v3472_v48  ;;  %vm987_vm5 = vcmp.eq.f32.partialorder %v3457_v3, inf }
 0x165   :  { %2007 = vrsqrt.f32 %v3524_v58  ;;  %v3535_v52 = vadd.f32 %v803_v38, %v3304_v30  ;;  %v804_v6 = vmul.f32 %v582_v45, %v582_v45  ;;  %v967_v23 = vsel %vm966_vm12, %v3426_v42, %v965_v2 }
 0x166   :  { %vm996_vm6 = vcmp.eq.f32.partialorder %v3472_v48, 0.0  ;;  %vm989_vm7 = vcmp.eq.f32.partialorder %v3457_v3, 0.0  ;;  %v1996_v26 = vpop.eup %1995  ;;  %v586_v39 = vpop.f32.mrf.mxu1  ;;  %v970_v24 = vsel %vm968_vm14, %v969_v20, %v967_v23  ;;  %v963_v47 = vsel %vm961_vm15, %v962_v15, %v960_v51 }
 0x167   :  { %v972_v30 = vmul.f32 %v1994_v4, %v3436_v54  ;;  %v990_v29 = vand.u32 2147483648, %v3457_v3  ;;  %2009 = vrsqrt.f32 %v3535_v52  ;;  %v3550_v40 = vadd.f32 %v804_v6, %v3316_v32  ;;  %1474 = vmatprep.mubr.f32.mxu0 %v970_v24 }
 0x168   :  { %v805_v46 = vmul.f32 %v586_v39, %v586_v39  ;;  %v979_v19 = vmul.f32 %v1996_v26, %v3446_v63  ;;  %v1998_v0 = vpop.eup %1997  ;;  %v588_v35 = vpop.f32.mrf.mxu1  ;;  %1475 = vmatmul.mubr.f32.gmra.mxu0 %v963_v47  ;;  %vm1008_vm8 = vcmp.eq.f32.partialorder %v3498_v61, inf  ;;  %v1011_v42 = vand.u32 2147483648, %v3498_v61 }
 0x169   :  { %v974_v1 = vsel %vm973_vm1, %v3436_v54, %v972_v30  ;;  %vm1001_vm9 = vcmp.eq.f32.partialorder %v3483_v5, inf  ;;  %2011 = vrsqrt.f32 %v3550_v40  ;;  %v806_v15 = vmul.f32 %v588_v35, %v588_v35 }
 0x16a   :  { %v3561_v32 = vadd.f32 %v805_v46, %v3320_v8  ;;  %v981_v20 = vsel %vm980_vm0, %v3446_v63, %v979_v19  ;;  %vm1010_vm10 = vcmp.eq.f32.partialorder %v3498_v61, 0.0  ;;  %v2000_v59 = vpop.eup %1999  ;;  %v592_v37 = vpop.f32.mrf.mxu1  ;;  %v977_v38 = vsel %vm975_vm3, %v976_v53, %v974_v1 }
 0x16b   :  { %v984_v21 = vsel %vm982_vm2, %v983_v13, %v981_v20  ;;  %v986_v2 = vmul.f32 %v1998_v0, %v3457_v3  ;;  %vm1003_vm11 = vcmp.eq.f32.partialorder %v3483_v5, 0.0  ;;  %v3575_v8 = vadd.f32 %v806_v15, %v3339_v7 }
 0x16c   :  { %2013 = vrsqrt.f32 %v3561_v32  ;;  %v807_v4 = vmul.f32 %v592_v37, %v592_v37  ;;  %1479 = vmatprep.mubr.f32.mxu0 %v984_v21  ;;  %v993_v45 = vmul.f32 %v2000_v59, %v3472_v48  ;;  %v2002_v51 = vpop.eup %2001  ;;  %v594_v6 = vpop.f32.mrf.mxu1  ;;  %v1004_v63 = vand.u32 2147483648, %v3483_v5 }
 0x16d   :  { %1480 = vmatmul.mubr.f32.gmra.mxu0 %v977_v38  ;;  %v988_v54 = vsel %vm987_vm5, %v3457_v3, %v986_v2  ;;  %vm1022_vm12 = vcmp.eq.f32.partialorder %v3524_v58, inf  ;;  %v1025_v53 = vand.u32 2147483648, %v3524_v58  ;;  %2015 = vrsqrt.f32 %v3575_v8 }
 0x16e   :  { %v3586_v7 = vadd.f32 %v807_v4, %v3343_v62  ;;  %v808_v13 = vmul.f32 %v594_v6, %v594_v6  ;;  %v995_v23 = vsel %vm994_vm4, %v3472_v48, %v993_v45  ;;  %vm1024_vm13 = vcmp.eq.f32.partialorder %v3524_v58, 0.0  ;;  %v2004_v26 = vpop.eup %2003  ;;  %v598_v39 = vpop.f32.mrf.mxu1 }
 0x16f   :  { %v998_v24 = vsel %vm996_vm6, %v997_v43, %v995_v23  ;;  %v991_v47 = vsel %vm989_vm7, %v990_v29, %v988_v54  ;;  %v1000_v30 = vmul.f32 %v2002_v51, %v3483_v5  ;;  %vm1015_vm14 = vcmp.eq.f32.partialorder %v3509_v9, inf }
 0x170   :  { %2017 = vrsqrt.f32 %v3586_v7  ;;  %v3600_v62 = vadd.f32 %v808_v13, %v3350_v10  ;;  %v809_v46 = vmul.f32 %v598_v39, %v598_v39  ;;  %1484 = vmatprep.mubr.f32.mxu0 %v998_v24  ;;  %v1007_v19 = vmul.f32 %v2004_v26, %v3498_v61  ;;  %v2006_v0 = vpop.eup %2005  ;;  %v600_v35 = vpop.f32.mrf.mxu1 }
 0x171   :  { %1485 = vmatmul.mubr.f32.gmra.mxu0 %v991_v47  ;;  %v1002_v3 = vsel %vm1001_vm9, %v3483_v5, %v1000_v30  ;;  %vm1017_vm15 = vcmp.eq.f32.partialorder %v3509_v9, 0.0  ;;  %v1018_v48 = vand.u32 2147483648, %v3509_v9  ;;  %vm1036_vm0 = vcmp.eq.f32.partialorder %v3550_v40, inf }
 0x172   :  { %2019 = vrsqrt.f32 %v3600_v62  ;;  %v3611_v10 = vadd.f32 %v809_v46, %v3362_v14  ;;  %v810_v43 = vmul.f32 %v600_v35, %v600_v35  ;;  %v1009_v29 = vsel %vm1008_vm8, %v3498_v61, %v1007_v19  ;;  %v2008_v1 = vpop.eup %2007  ;;  %v604_v15 = vpop.f32.mrf.mxu1 }
 0x173   :  { %vm1038_vm1 = vcmp.eq.f32.partialorder %v3550_v40, 0.0  ;;  %v1012_v20 = vsel %vm1010_vm10, %v1011_v42, %v1009_v29  ;;  %v1005_v59 = vsel %vm1003_vm11, %v1004_v63, %v1002_v3  ;;  %v1014_v37 = vmul.f32 %v2006_v0, %v3509_v9 }
 0x174   :  { %v1039_v14 = vand.u32 2147483648, %v3550_v40  ;;  %v3624_v21 = vadd.f32 %v810_v43, %v3366_v25  ;;  %v811_v38 = vmul.f32 %v604_v15, %v604_v15  ;;  %1489 = vmatprep.mubr.f32.mxu0 %v1012_v20  ;;  %v1021_v2 = vmul.f32 %v2008_v1, %v3524_v58  ;;  %v2010_v4 = vpop.eup %2009  ;;  %v606_v61 = vpop.f32.mrf.mxu1 }
 0x175   :  { %vm1029_vm2 = vcmp.eq.f32.partialorder %v3535_v52, inf  ;;  %2021 = vrsqrt.f32 %v3611_v10  ;;  %1490 = vmatmul.mubr.f32.gmra.mxu0 %v1005_v59  ;;  %v1016_v5 = vsel %vm1015_vm14, %v3509_v9, %v1014_v37  ;;  %vm1031_vm3 = vcmp.eq.f32.partialorder %v3535_v52, 0.0 }
 0x176   :  { %v1032_v25 = vand.u32 2147483648, %v3535_v52  ;;  %2023 = vrsqrt.f32 %v3624_v21  ;;  %v3636_v42 = vadd.f32 %v811_v38, %v3385_v18  ;;  %v812_v45 = vmul.f32 %v606_v61, %v606_v61  ;;  %v2012_v6 = vpop.eup %2011  ;;  %v610_v54 = vpop.f32.mrf.mxu1 }
 0x177   :  { %v1023_v51 = vsel %vm1022_vm12, %v3524_v58, %v1021_v2  ;;  %v1019_v13 = vsel %vm1017_vm15, %v1018_v48, %v1016_v5  ;;  %v1028_v23 = vmul.f32 %v2010_v4, %v3535_v52  ;;  %vm1050_vm4 = vcmp.eq.f32.partialorder %v3575_v8, inf }
 0x178   :  { %v1026_v63 = vsel %vm1024_vm13, %v1025_v53, %v1023_v51  ;;  %v3648_v18 = vadd.f32 %v812_v45, %v3389_v31  ;;  %v813_v26 = vmul.f32 %v610_v54, %v610_v54  ;;  %v1035_v39 = vmul.f32 %v2012_v6, %v3550_v40  ;;  %v612_v58 = vpop.f32.mrf.mxu1 }
 0x179   :  { %1494 = vmatprep.mubr.f32.mxu0 %v1026_v63  ;;  %vm1052_vm5 = vcmp.eq.f32.partialorder %v3575_v8, 0.0  ;;  %v2014_v24 = vpop.eup %2013  ;;  %2025 = vrsqrt.f32 %v3636_v42  ;;  %v1030_v9 = vsel %vm1029_vm2, %v3535_v52, %v1028_v23  ;;  %v1053_v53 = vand.u32 2147483648, %v3575_v8 }
 0x17a   :  { %1495 = vmatmul.mubr.f32.gmra.mxu0 %v1019_v13  ;;  %vm1043_vm6 = vcmp.eq.f32.partialorder %v3561_v32, inf  ;;  %2027 = vrsqrt.f32 %v3648_v18  ;;  %v3660_v31 = vadd.f32 %v813_v26, %v3397_v56  ;;  %v814_v47 = vmul.f32 %v612_v58, %v612_v58  ;;  %v2016_v46 = vpop.eup %2015  ;;  %v616_v19 = vpop.f32.mrf.mxu1 }
 0x17b   :  { %v1037_v30 = vsel %vm1036_vm0, %v3550_v40, %v1035_v39  ;;  %v1033_v35 = vsel %vm1031_vm3, %v1032_v25, %v1030_v9  ;;  %v1042_v3 = vmul.f32 %v2014_v24, %v3561_v32  ;;  %vm1045_vm7 = vcmp.eq.f32.partialorder %v3561_v32, 0.0 }
 0x17c   :  { %v1040_v0 = vsel %vm1038_vm1, %v1039_v14, %v1037_v30  ;;  %v3672_v56 = vadd.f32 %v814_v47, %v3409_v27  ;;  %v815_v48 = vmul.f32 %v616_v19, %v616_v19  ;;  %v1049_v43 = vmul.f32 %v2016_v46, %v3575_v8  ;;  %v618_v40 = vpop.f32.mrf.mxu1 }
 0x17d   :  { %1499 = vmatprep.mubr.f32.mxu0 %v1040_v0  ;;  %v1046_v29 = vand.u32 2147483648, %v3561_v32  ;;  %v2018_v1 = vpop.eup %2017  ;;  %2029 = vrsqrt.f32 %v3660_v31  ;;  %v1044_v52 = vsel %vm1043_vm6, %v3561_v32, %v1042_v3  ;;  %vm1064_vm8 = vcmp.eq.f32.partialorder %v3600_v62, inf }
 0x17e   :  { %1500 = vmatmul.mubr.f32.gmra.mxu0 %v1033_v35  ;;  %vm1066_vm9 = vcmp.eq.f32.partialorder %v3600_v62, 0.0  ;;  %2031 = vrsqrt.f32 %v3672_v56  ;;  %v3684_v27 = vadd.f32 %v815_v48, %v3411_v41  ;;  %v816_v15 = vmul.f32 %v618_v40, %v618_v40  ;;  %v622_v37 = vpop.f32.mrf.mxu1 }
 0x17f   :  { %v1051_v20 = vsel %vm1050_vm4, %v3575_v8, %v1049_v43  ;;  %v2020_v59 = vpop.eup %2019  ;;  %v1047_v38 = vsel %vm1045_vm7, %v1046_v29, %v1044_v52  ;;  %v1067_v2 = vand.u32 2147483648, %v3600_v62  ;;  %v1056_v4 = vmul.f32 %v2018_v1, %v3586_v7 }
 0x180   :  { %v1054_v14 = vsel %vm1052_vm5, %v1053_v53, %v1051_v20  ;;  %v3696_v41 = vadd.f32 %v816_v15, %v3417_v49  ;;  %v817_v61 = vmul.f32 %v622_v37, %v622_v37  ;;  %v1063_v5 = vmul.f32 %v2020_v59, %v3600_v62  ;;  %v624_v8 = vpop.f32.mrf.mxu1  ;;  %v4215_v37 = vld [vmem:[#allocation7_spill] sm:$0xff] }
 0x181   :  { %1504 = vmatprep.mubr.f32.mxu0 %v1054_v14  ;;  %vm1057_vm10 = vcmp.eq.f32.partialorder %v3586_v7, inf  ;;  %2033 = vrsqrt.f32 %v3684_v27  ;;  %vm1059_vm11 = vcmp.eq.f32.partialorder %v3586_v7, 0.0  ;;  %v1060_v25 = vand.u32 2147483648, %v3586_v7 }
 0x182   :  { %1505 = vmatmul.mubr.f32.gmra.mxu0 %v1047_v38  ;;  %v1058_v32 = vsel %vm1057_vm10, %v3586_v7, %v1056_v4  ;;  %v2022_v45 = vpop.eup %2021  ;;  %2035 = vrsqrt.f32 %v3696_v41  ;;  %v3706_v49 = vadd.f32 %v817_v61, %v3422_v22  ;;  %v818_v51 = vmul.f32 %v624_v8, %v624_v8  ;;  %v628_v63 = vpop.f32.mrf.mxu1 }
 0x183   :  { %v1065_v6 = vsel %vm1064_vm8, %v3600_v62, %v1063_v5  ;;  %v2024_v54 = vpop.eup %2023  ;;  %v1061_v23 = vsel %vm1059_vm11, %v1060_v25, %v1058_v32  ;;  %vm1078_vm12 = vcmp.eq.f32.partialorder %v3624_v21, inf  ;;  %vm1080_vm13 = vcmp.eq.f32.partialorder %v3624_v21, 0.0 }
 0x184   :  { %v1068_v13 = vsel %vm1066_vm9, %v1067_v2, %v1065_v6  ;;  %v3716_v7 = vadd.f32 %v818_v51, %v3428_v34  ;;  %v819_v22 = vmul.f32 %v628_v63, %v628_v63  ;;  %v1077_v26 = vmul.f32 %v2024_v54, %v3624_v21  ;;  %v630_v24 = vpop.f32.mrf.mxu1 }
 0x185   :  { %1509 = vmatprep.mubr.f32.mxu0 %v1068_v13  ;;  %v1081_v39 = vand.u32 2147483648, %v3624_v21  ;;  %2037 = vrsqrt.f32 %v3706_v49  ;;  %v1070_v62 = vmul.f32 %v2022_v45, %v3611_v10  ;;  %vm1071_vm14 = vcmp.eq.f32.partialorder %v3611_v10, inf }
 0x186   :  { %1510 = vmatmul.mubr.f32.gmra.mxu0 %v1061_v23  ;;  %v1074_v58 = vand.u32 2147483648, %v3611_v10  ;;  %v2026_v9 = vpop.eup %2025  ;;  %2039 = vrsqrt.f32 %v3716_v7  ;;  %v3726_v34 = vadd.f32 %v819_v22, %v3213_v28  ;;  %v820_v53 = vmul.f32 %v630_v24, %v630_v24  ;;  %v634_v46 = vpop.f32.mrf.mxu1 }
 0x187   :  { %v1079_v47 = vsel %vm1078_vm12, %v3624_v21, %v1077_v26  ;;  %v2028_v30 = vpop.eup %2027  ;;  %v1072_v0 = vsel %vm1071_vm14, %v3611_v10, %v1070_v62  ;;  %vm1073_vm15 = vcmp.eq.f32.partialorder %v3611_v10, 0.0  ;;  %vm1092_vm0 = vcmp.eq.f32.partialorder %v3648_v18, inf }
 0x188   :  { %v1082_v19 = vsel %vm1080_vm13, %v1081_v39, %v1079_v47  ;;  %v3737_v35 = vadd.f32 %v820_v53, %v3215_v33  ;;  %v821_v28 = vmul.f32 %v634_v46, %v634_v46  ;;  %v1075_v3 = vsel %vm1073_vm15, %v1074_v58, %v1072_v0  ;;  %v636_v48 = vpop.f32.mrf.mxu1 }
 0x189   :  { %1514 = vmatprep.mubr.f32.mxu0 %v1082_v19  ;;  %vm1094_vm1 = vcmp.eq.f32.partialorder %v3648_v18, 0.0  ;;  %2041 = vrsqrt.f32 %v3726_v34  ;;  %v1091_v21 = vmul.f32 %v2028_v30, %v3648_v18  ;;  %v1095_v43 = vand.u32 2147483648, %v3648_v18 }
 0x18a   :  { %1515 = vmatmul.mubr.f32.gmra.mxu0 %v1075_v3  ;;  %v1084_v10 = vmul.f32 %v2026_v9, %v3636_v42  ;;  %v2030_v29 = vpop.eup %2029  ;;  %2043 = vrsqrt.f32 %v3737_v35  ;;  %v3746_v33 = vadd.f32 %v821_v28, %v3217_v36  ;;  %v822_v1 = vmul.f32 %v636_v48, %v636_v48  ;;  %v640_v52 = vpop.f32.mrf.mxu1 }
 0x18b   :  { %vm1085_vm2 = vcmp.eq.f32.partialorder %v3636_v42, inf  ;;  %v2032_v40 = vpop.eup %2031  ;;  %v1093_v15 = vsel %vm1092_vm0, %v3648_v18, %v1091_v21  ;;  %vm1087_vm3 = vcmp.eq.f32.partialorder %v3636_v42, 0.0  ;;  %v1088_v59 = vand.u32 2147483648, %v3636_v42 }
 0x18c   :  { %v1086_v20 = vsel %vm1085_vm2, %v3636_v42, %v1084_v10  ;;  %v3756_v14 = vadd.f32 %v822_v1, %v4215_v37  ;;  %v823_v36 = vmul.f32 %v640_v52, %v640_v52  ;;  %v1096_v38 = vsel %vm1094_vm1, %v1095_v43, %v1093_v15  ;;  %v642_v2 = vpop.f32.mrf.mxu1  ;;  %v4216_v42 = vld [vmem:[#allocation8_spill] sm:$0xff] }
 0x18d   :  { %vm1106_vm4 = vcmp.eq.f32.partialorder %v3672_v56, inf  ;;  %2045 = vrsqrt.f32 %v3746_v33  ;;  %1519 = vmatprep.mubr.f32.mxu0 %v1096_v38  ;;  %v1089_v4 = vsel %vm1087_vm3, %v1088_v59, %v1086_v20  ;;  %v1105_v61 = vmul.f32 %v2032_v40, %v3672_v56 }
 0x18e   :  { %vm1108_vm5 = vcmp.eq.f32.partialorder %v3672_v56, 0.0  ;;  %v2034_v5 = vpop.eup %2033  ;;  %v3765_v8 = vadd.f32 %v823_v36, %v4216_v42  ;;  %v824_v32 = vmul.f32 %v642_v2, %v642_v2  ;;  %1520 = vmatmul.mubr.f32.gmra.mxu0 %v1089_v4  ;;  %v1109_v18 = vand.u32 2147483648, %v3672_v56  ;;  %v646_v51 = vpop.f32.mrf.mxu1 }
 0x18f   :  { %v1098_v25 = vmul.f32 %v2030_v29, %v3660_v31  ;;  %v2036_v45 = vpop.eup %2035  ;;  %2047 = vrsqrt.f32 %v3756_v14  ;;  %v1107_v6 = vsel %vm1106_vm4, %v3672_v56, %v1105_v61  ;;  %vm1099_vm6 = vcmp.eq.f32.partialorder %v3660_v31, inf }
 0x190   :  { %vm1101_vm7 = vcmp.eq.f32.partialorder %v3660_v31, 0.0  ;;  %v3776_v54 = vadd.f32 %v824_v32, %v3225_v11  ;;  %v825_v63 = vmul.f32 %v646_v51, %v646_v51  ;;  %v1110_v13 = vsel %vm1108_vm5, %v1109_v18, %v1107_v6  ;;  %v648_v22 = vpop.f32.mrf.mxu1 }
 0x191   :  { %v1102_v23 = vand.u32 2147483648, %v3660_v31  ;;  %2049 = vrsqrt.f32 %v3765_v8  ;;  %1524 = vmatprep.mubr.f32.mxu0 %v1110_v13  ;;  %v1100_v26 = vsel %vm1099_vm6, %v3660_v31, %v1098_v25  ;;  %v1119_v39 = vmul.f32 %v2036_v45, %v3696_v41 }
 0x192   :  { %vm1120_vm8 = vcmp.eq.f32.partialorder %v3696_v41, inf  ;;  %v2038_v56 = vpop.eup %2037  ;;  %v3784_v24 = vadd.f32 %v825_v63, %v3227_v16  ;;  %v826_v11 = vmul.f32 %v648_v22, %v648_v22  ;;  %vm1122_vm9 = vcmp.eq.f32.partialorder %v3696_v41, 0.0  ;;  %v652_v9 = vpop.f32.mrf.mxu1 }
 0x193   :  { %v1103_v62 = vsel %vm1101_vm7, %v1102_v23, %v1100_v26  ;;  %v2040_v58 = vpop.eup %2039  ;;  %2051 = vrsqrt.f32 %v3776_v54  ;;  %v1121_v53 = vsel %vm1120_vm8, %v3696_v41, %v1119_v39  ;;  %v1123_v31 = vand.u32 2147483648, %v3696_v41 }
 0x194   :  { %1525 = vmatmul.mubr.f32.gmra.mxu0 %v1103_v62  ;;  %v1112_v47 = vmul.f32 %v2034_v5, %v3684_v27  ;;  %2053 = vrsqrt.f32 %v3784_v24  ;;  %v3793_v16 = vadd.f32 %v826_v11, %v3229_v57  ;;  %v827_v30 = vmul.f32 %v652_v9, %v652_v9  ;;  %v654_v19 = vpop.f32.mrf.mxu1  ;;  %v4217_v62 = vld [vmem:[#allocation9_spill] sm:$0xff] }
 0x195   :  { %vm1113_vm10 = vcmp.eq.f32.partialorder %v3684_v27, inf  ;;  %v1124_v46 = vsel %vm1122_vm9, %v1123_v31, %v1121_v53  ;;  %v1116_v28 = vand.u32 2147483648, %v3684_v27  ;;  %v1133_v3 = vmul.f32 %v2040_v58, %v3716_v7 }
 0x196   :  { %v1114_v0 = vsel %vm1113_vm10, %v3684_v27, %v1112_v47  ;;  %v2042_v48 = vpop.eup %2041  ;;  %v3800_v41 = vadd.f32 %v827_v30, %v3231_v60  ;;  %1529 = vmatprep.mubr.f32.mxu0 %v1124_v46  ;;  %v828_v21 = vmul.f32 %v654_v19, %v654_v19  ;;  %vm1115_vm11 = vcmp.eq.f32.partialorder %v3684_v27, 0.0  ;;  %v658_v10 = vpop.f32.mrf.mxu1  ;;  %v4218_v46 = vld [vmem:[#allocation10_spill] sm:$0xff] }
 0x197   :  { %vm1134_vm12 = vcmp.eq.f32.partialorder %v3716_v7, inf  ;;  %v2044_v57 = vpop.eup %2043  ;;  %2055 = vrsqrt.f32 %v3793_v16  ;;  %v1117_v43 = vsel %vm1115_vm11, %v1116_v28, %v1114_v0  ;;  %v1137_v1 = vand.u32 2147483648, %v3716_v7 }
 0x198   :  { %v1135_v29 = vsel %vm1134_vm12, %v3716_v7, %v1133_v3  ;;  %v3808_v40 = vadd.f32 %v828_v21, %v3239_v44  ;;  %1530 = vmatmul.mubr.f32.gmra.mxu0 %v1117_v43  ;;  %v829_v60 = vmul.f32 %v658_v10, %v658_v10  ;;  %vm1136_vm13 = vcmp.eq.f32.partialorder %v3716_v7, 0.0  ;;  %v660_v15 = vpop.f32.mrf.mxu1 }
 0x199   :  { %v1126_v27 = vmul.f32 %v2038_v56, %v3706_v49  ;;  %2057 = vrsqrt.f32 %v3800_v41  ;;  %v1138_v52 = vsel %vm1136_vm13, %v1137_v1, %v1135_v29  ;;  %vm1127_vm14 = vcmp.eq.f32.partialorder %v3706_v49, inf }
 0x19a   :  { %v1130_v20 = vand.u32 2147483648, %v3706_v49  ;;  %v2046_v59 = vpop.eup %2045  ;;  %v3816_v37 = vadd.f32 %v829_v60, %v3241_v17  ;;  %1534 = vmatprep.mubr.f32.mxu0 %v1138_v52  ;;  %v830_v44 = vmul.f32 %v660_v15, %v660_v15  ;;  %vm1129_vm15 = vcmp.eq.f32.partialorder %v3706_v49, 0.0  ;;  %v664_v38 = vpop.f32.mrf.mxu1  ;;  %v4220_v52 = vld [vmem:[#allocation12_spill] sm:$0xff] }
 0x19b   :  { %v1128_v36 = vsel %vm1127_vm14, %v3706_v49, %v1126_v27  ;;  %2059 = vrsqrt.f32 %v3808_v40  ;;  %v1147_v2 = vmul.f32 %v2044_v57, %v3737_v35  ;;  %vm1148_vm0 = vcmp.eq.f32.partialorder %v3737_v35, inf  ;;  %v4219_v57 = vld [vmem:[#allocation11_spill] sm:$0xff] }
 0x19c   :  { %v1131_v7 = vsel %vm1129_vm15, %v1130_v20, %v1128_v36  ;;  %v2048_v4 = vpop.eup %2047  ;;  %v3824_v61 = vadd.f32 %v830_v44, %v3247_v50  ;;  %v831_v17 = vmul.f32 %v664_v38, %v664_v38  ;;  %vm1150_vm1 = vcmp.eq.f32.partialorder %v3737_v35, 0.0  ;;  %v666_v42 = vpop.f32.mrf.mxu1 }
 0x19d   :  { %1535 = vmatmul.mubr.f32.gmra.mxu0 %v1131_v7  ;;  %v1151_v5 = vand.u32 2147483648, %v3737_v35  ;;  %2061 = vrsqrt.f32 %v3816_v37  ;;  %v1149_v49 = vsel %vm1148_vm0, %v3737_v35, %v1147_v2  ;;  %v1140_v32 = vmul.f32 %v2042_v48, %v3726_v34  ;;  %v4221_v2 = vld [vmem:[#allocation13_spill] sm:$0xff] }
 0x19e   :  { %vm1141_vm2 = vcmp.eq.f32.partialorder %v3726_v34, inf  ;;  %v2050_v18 = vpop.eup %2049  ;;  %v3833_v25 = vadd.f32 %v831_v17, %v3249_v55  ;;  %v832_v45 = vmul.f32 %v666_v42, %v666_v42  ;;  %vm1143_vm3 = vcmp.eq.f32.partialorder %v3726_v34, 0.0  ;;  %v670_v6 = vpop.f32.mrf.mxu1 }
 0x19f   :  { %v1152_v50 = vsel %vm1150_vm1, %v1151_v5, %v1149_v49  ;;  %2063 = vrsqrt.f32 %v3824_v61  ;;  %v1142_v51 = vsel %vm1141_vm2, %v3726_v34, %v1140_v32  ;;  %v1144_v35 = vand.u32 2147483648, %v3726_v34 }
 0x1a0   :  { %1539 = vmatprep.mubr.f32.mxu0 %v1152_v50  ;;  %v1161_v63 = vmul.f32 %v2048_v4, %v3756_v14  ;;  %v2052_v13 = vpop.eup %2051  ;;  %2065 = vrsqrt.f32 %v3833_v25  ;;  %v3842_v55 = vadd.f32 %v832_v45, %v3255_v12  ;;  %v833_v23 = vmul.f32 %v670_v6, %v670_v6  ;;  %v672_v11 = vpop.f32.mrf.mxu1 }
 0x1a1   :  { %vm1162_vm4 = vcmp.eq.f32.partialorder %v3756_v14, inf  ;;  %v2054_v22 = vpop.eup %2053  ;;  %v1145_v26 = vsel %vm1143_vm3, %v1144_v35, %v1142_v51  ;;  %v1165_v56 = vand.u32 2147483648, %v3756_v14  ;;  %v1154_v34 = vmul.f32 %v2046_v59, %v3746_v33  ;;  %v4222_v51 = vld [vmem:[#allocation14_spill] sm:$0xff] }
 0x1a2   :  { %v1163_v39 = vsel %vm1162_vm4, %v3756_v14, %v1161_v63  ;;  %1540 = vmatmul.mubr.f32.gmra.mxu0 %v1145_v26  ;;  %v3849_v58 = vadd.f32 %v833_v23, %v4217_v62  ;;  %vm1164_vm5 = vcmp.eq.f32.partialorder %v3756_v14, 0.0  ;;  %v834_v12 = vmul.f32 %v672_v11, %v672_v11  ;;  %v676_v47 = vpop.f32.mrf.mxu1  ;;  %v4223_v26 = vld [vmem:[#allocation15_spill] sm:$0xff] }
 0x1a3   :  { %vm1155_vm6 = vcmp.eq.f32.partialorder %v3746_v33, inf  ;;  %2067 = vrsqrt.f32 %v3842_v55  ;;  %v1166_v9 = vsel %vm1164_vm5, %v1165_v56, %v1163_v39  ;;  %v1158_v31 = vand.u32 2147483648, %v3746_v33 }
 0x1a4   :  { %v1156_v53 = vsel %vm1155_vm6, %v3746_v33, %v1154_v34  ;;  %v2056_v30 = vpop.eup %2055  ;;  %1544 = vmatprep.mubr.f32.mxu0 %v1166_v9  ;;  %v3857_v19 = vadd.f32 %v834_v12, %v4218_v46  ;;  %vm1157_vm7 = vcmp.eq.f32.partialorder %v3746_v33, 0.0  ;;  %v835_v0 = vmul.f32 %v676_v47, %v676_v47  ;;  %v678_v48 = vpop.f32.mrf.mxu1  ;;  %v4224_v9 = vld [vmem:[#allocation16_spill] sm:$0xff] }
 0x1a5   :  { %v1175_v14 = vmul.f32 %v2052_v13, %v3776_v54  ;;  %2069 = vrsqrt.f32 %v3849_v58  ;;  %v1159_v28 = vsel %vm1157_vm7, %v1158_v31, %v1156_v53  ;;  %vm1176_vm8 = vcmp.eq.f32.partialorder %v3776_v54, inf }
 0x1a6   :  { %v1179_v3 = vand.u32 2147483648, %v3776_v54  ;;  %v2058_v21 = vpop.eup %2057  ;;  %1545 = vmatmul.mubr.f32.gmra.mxu0 %v1159_v28  ;;  %v3865_v43 = vadd.f32 %v835_v0, %v4219_v57  ;;  %vm1178_vm9 = vcmp.eq.f32.partialorder %v3776_v54, 0.0  ;;  %v836_v33 = vmul.f32 %v678_v48, %v678_v48  ;;  %v682_v60 = vpop.f32.mrf.mxu1  ;;  %v4225_v28 = vld [vmem:[#allocation17_spill] sm:$0xff] }
 0x1a7   :  { %v1177_v10 = vsel %vm1176_vm8, %v3776_v54, %v1175_v14  ;;  %2071 = vrsqrt.f32 %v3857_v19  ;;  %v1168_v1 = vmul.f32 %v2050_v18, %v3765_v8  ;;  %vm1169_vm10 = vcmp.eq.f32.partialorder %v3765_v8, inf }
 0x1a8   :  { %v1180_v29 = vsel %vm1178_vm9, %v1179_v3, %v1177_v10  ;;  %v2060_v27 = vpop.eup %2059  ;;  %v3873_v15 = vadd.f32 %v836_v33, %v4220_v52  ;;  %vm1171_vm11 = vcmp.eq.f32.partialorder %v3765_v8, 0.0  ;;  %v1172_v20 = vand.u32 2147483648, %v3765_v8  ;;  %v684_v36 = vpop.f32.mrf.mxu1  ;;  %v4226_v52 = vld [vmem:[#allocation18_spill] sm:$0xff] }
 0x1a9   :  { %1549 = vmatprep.mubr.f32.mxu0 %v1180_v29  ;;  %v837_v59 = vmul.f32 %v682_v60, %v682_v60  ;;  %2073 = vrsqrt.f32 %v3865_v43  ;;  %v1170_v54 = vsel %vm1169_vm10, %v3765_v8, %v1168_v1  ;;  %v1189_v44 = vmul.f32 %v2056_v30, %v3793_v16 }
 0x1aa   :  { %vm1190_vm12 = vcmp.eq.f32.partialorder %v3793_v16, inf  ;;  %v2062_v7 = vpop.eup %2061  ;;  %v1173_v38 = vsel %vm1171_vm11, %v1172_v20, %v1170_v54  ;;  %vm1192_vm13 = vcmp.eq.f32.partialorder %v3793_v16, 0.0  ;;  %v1193_v17 = vand.u32 2147483648, %v3793_v16  ;;  %v688_v42 = vpop.f32.mrf.mxu1 }
 0x1ab   :  { %v3882_v4 = vadd.f32 %v837_v59, %v4221_v2  ;;  %2075 = vrsqrt.f32 %v3873_v15  ;;  %1550 = vmatmul.mubr.f32.gmra.mxu0 %v1173_v38  ;;  %v1191_v5 = vsel %vm1190_vm12, %v3793_v16, %v1189_v44  ;;  %v838_v8 = vmul.f32 %v684_v36, %v684_v36  ;;  %v4227_v2 = vld [vmem:[#allocation19_spill] sm:$0xff] }
 0x1ac   :  { %v1182_v49 = vmul.f32 %v2054_v22, %v3784_v24  ;;  %v2064_v32 = vpop.eup %2063  ;;  %v1194_v18 = vsel %vm1192_vm13, %v1193_v17, %v1191_v5  ;;  %vm1183_vm14 = vcmp.eq.f32.partialorder %v3784_v24, inf  ;;  %vm1185_vm15 = vcmp.eq.f32.partialorder %v3784_v24, 0.0  ;;  %v690_v13 = vpop.f32.mrf.mxu1 }
 0x1ad   :  { %v1186_v50 = vand.u32 2147483648, %v3784_v24  ;;  %v3892_v45 = vpop.eup %2065  ;;  %1554 = vmatprep.mubr.f32.mxu0 %v1194_v18  ;;  %v3895_v35 = vadd.f32 %v838_v8, %v4222_v51  ;;  %v839_v6 = vmul.f32 %v688_v42, %v688_v42  ;;  %v1203_v63 = vmul.f32 %v2060_v27, %v3808_v40 }
 0x1ae   :  { %v1184_v16 = vsel %vm1183_vm14, %v3784_v24, %v1182_v49  ;;  %2077 = vrsqrt.f32 %v3882_v4  ;;  %vm1204_vm0 = vcmp.eq.f32.partialorder %v3808_v40, inf  ;;  %v1207_v22 = vand.u32 2147483648, %v3808_v40  ;;  %v694_v11 = vpop.f32.mrf.mxu1 }
 0x1af   :  { %v1187_v23 = vsel %vm1185_vm15, %v1186_v50, %v1184_v16  ;;  %v3903_v39 = vadd.f32 %v839_v6, %v4223_v26  ;;  %v1205_v56 = vsel %vm1204_vm0, %v3808_v40, %v1203_v63  ;;  %vm1206_vm1 = vcmp.eq.f32.partialorder %v3808_v40, 0.0 }
 0x1b0   :  { %1555 = vmatmul.mubr.f32.gmra.mxu0 %v1187_v23  ;;  %v840_v24 = vmul.f32 %v690_v13, %v690_v13  ;;  %v2068_v34 = vpop.eup %2067  ;;  %2079 = vrsqrt.f32 %v3895_v35  ;;  %v1208_v62 = vsel %vm1206_vm1, %v1207_v22, %v1205_v56  ;;  %v1196_v12 = vmul.f32 %v2058_v21, %v3800_v41  ;;  %v696_v40 = vpop.f32.mrf.mxu1  ;;  %v4229_v22 = vld [vmem:[#allocation21_spill] sm:$0xff] }
 0x1b1   :  { %vm1197_vm2 = vcmp.eq.f32.partialorder %v3800_v41, inf  ;;  %1559 = vmatprep.mubr.f32.mxu0 %v1208_v62  ;;  %vm1199_vm3 = vcmp.eq.f32.partialorder %v3800_v41, 0.0  ;;  %v1200_v31 = vand.u32 2147483648, %v3800_v41  ;;  %v841_v47 = vmul.f32 %v694_v11, %v694_v11 }
 0x1b2   :  { %v3911_v53 = vadd.f32 %v840_v24, %v4224_v9  ;;  %v3915_v30 = vpop.eup %2069  ;;  %2081 = vrsqrt.f32 %v3903_v39  ;;  %v1198_v46 = vsel %vm1197_vm2, %v3800_v41, %v1196_v12  ;;  %v1217_v0 = vmul.f32 %v2064_v32, %v3824_v61  ;;  %v700_v21 = vpop.f32.mrf.mxu1  ;;  %v4228_v32 = vld [vmem:[#allocation20_spill] sm:$0xff]  ;;  %v4230_v9 = vld [vmem:[#allocation22_spill] sm:$0xff] }
 0x1b3   :  { %vm1218_vm4 = vcmp.eq.f32.partialorder %v3824_v61, inf  ;;  %v1201_v14 = vsel %vm1199_vm3, %v1200_v31, %v1198_v46  ;;  %v3922_v3 = vadd.f32 %v841_v47, %v4225_v28  ;;  %vm1220_vm5 = vcmp.eq.f32.partialorder %v3824_v61, 0.0  ;;  %v4231_v28 = vld [vmem:[#allocation3_spill] sm:$0xff] }
 0x1b4   :  { %v1221_v48 = vand.u32 2147483648, %v3824_v61  ;;  %v2072_v57 = vpop.eup %2071  ;;  %2083 = vrsqrt.f32 %v3911_v53  ;;  %1560 = vmatmul.mubr.f32.gmra.mxu0 %v1201_v14  ;;  %v1219_v10 = vsel %vm1218_vm4, %v3824_v61, %v1217_v0  ;;  %v842_v41 = vmul.f32 %v696_v40, %v696_v40  ;;  %v702_v60 = vpop.f32.mrf.mxu1 }
 0x1b5   :  { %v1210_v33 = vmul.f32 %v2062_v7, %v3816_v37  ;;  %vm1211_vm6 = vcmp.eq.f32.partialorder %v3816_v37, inf  ;;  %vm1213_vm7 = vcmp.eq.f32.partialorder %v3816_v37, 0.0  ;;  %v1214_v1 = vand.u32 2147483648, %v3816_v37 }
 0x1b6   :  { %v1222_v29 = vsel %vm1220_vm5, %v1221_v48, %v1219_v10  ;;  %v3932_v27 = vpop.eup %2073  ;;  %v3935_v20 = vadd.f32 %v842_v41, %v4226_v52  ;;  %v843_v61 = vmul.f32 %v700_v21, %v700_v21  ;;  %v1231_v54 = vmul.f32 %v2068_v34, %v3842_v55  ;;  %v706_v7 = vpop.f32.mrf.mxu1  ;;  %v4232_v41 = vld [vmem:[#allocation5_spill] sm:$0xff] }
 0x1b7   :  { %1564 = vmatprep.mubr.f32.mxu0 %v1222_v29  ;;  %v1212_v59 = vsel %vm1211_vm6, %v3816_v37, %v1210_v33  ;;  %2085 = vrsqrt.f32 %v3922_v3  ;;  %vm1232_vm8 = vcmp.eq.f32.partialorder %v3842_v55, inf  ;;  %v1235_v36 = vand.u32 2147483648, %v3842_v55 }
 0x1b8   :  { %v1215_v44 = vsel %vm1213_vm7, %v1214_v1, %v1212_v59  ;;  %v2076_v38 = vpop.eup %2075  ;;  %v3943_v17 = vadd.f32 %v843_v61, %v4227_v2  ;;  %v1233_v5 = vsel %vm1232_vm8, %v3842_v55, %v1231_v54  ;;  %vm1234_vm9 = vcmp.eq.f32.partialorder %v3842_v55, 0.0  ;;  %v708_v42 = vpop.f32.mrf.mxu1  ;;  %v4233_v61 = vld [vmem:[#allocation2_spill] sm:$0xff] }
 0x1b9   :  { %1565 = vmatmul.mubr.f32.gmra.mxu0 %v1215_v44  ;;  %v844_v37 = vmul.f32 %v702_v60, %v702_v60  ;;  %2087 = vrsqrt.f32 %v3935_v20  ;;  %v1236_v8 = vsel %vm1234_vm9, %v1235_v36, %v1233_v5  ;;  %v1224_v49 = vmul.f32 %v3892_v45, %v3833_v25 }
 0x1ba   :  { %vm1225_vm10 = vcmp.eq.f32.partialorder %v3833_v25, inf  ;;  %1569 = vmatprep.mubr.f32.mxu0 %v1236_v8  ;;  %vm1227_vm11 = vcmp.eq.f32.partialorder %v3833_v25, 0.0  ;;  %v1228_v50 = vand.u32 2147483648, %v3833_v25  ;;  %v845_v51 = vmul.f32 %v706_v7, %v706_v7  ;;  %v712_v45 = vpop.f32.mrf.mxu1  ;;  %v4234_v8 = vld [vmem:[#allocation4_spill] sm:$0xff] }
 0x1bb   :  { %v3952_v18 = vadd.f32 %v844_v37, %v4228_v32  ;;  %v2078_v55 = vpop.eup %2077  ;;  %2089 = vrsqrt.f32 %v3943_v17  ;;  %v1226_v16 = vsel %vm1225_vm10, %v3833_v25, %v1224_v49  ;;  %v1245_v6 = vmul.f32 %v2072_v57, %v3857_v19 }
 0x1bc   :  { %vm1246_vm12 = vcmp.eq.f32.partialorder %v3857_v19, inf  ;;  %v1229_v63 = vsel %vm1227_vm11, %v1228_v50, %v1226_v16  ;;  %vm1248_vm13 = vcmp.eq.f32.partialorder %v3857_v19, 0.0  ;;  %v1249_v13 = vand.u32 2147483648, %v3857_v19  ;;  %v714_v11 = vpop.f32.mrf.mxu1 }
 0x1bd   :  { %2091 = vrsqrt.f32 %v3952_v18  ;;  %v2080_v23 = vpop.eup %2079  ;;  %1570 = vmatmul.mubr.f32.gmra.mxu0 %v1229_v63  ;;  %v3964_v26 = vadd.f32 %v845_v51, %v4229_v22  ;;  %v1247_v56 = vsel %vm1246_vm12, %v3857_v19, %v1245_v6  ;;  %v846_v25 = vmul.f32 %v708_v42, %v708_v42 }
 0x1be   :  { %v1238_v24 = vmul.f32 %v3915_v30, %v3849_v58  ;;  %v1250_v34 = vsel %vm1248_vm13, %v1249_v13, %v1247_v56  ;;  %vm1239_vm14 = vcmp.eq.f32.partialorder %v3849_v58, inf  ;;  %vm1241_vm15 = vcmp.eq.f32.partialorder %v3849_v58, 0.0  ;;  %v718_v46 = vpop.f32.mrf.mxu1 }
 0x1bf   :  { %v1242_v62 = vand.u32 2147483648, %v3849_v58  ;;  %v2082_v12 = vpop.eup %2081  ;;  %1574 = vmatprep.mubr.f32.mxu0 %v1250_v34  ;;  %v3973_v31 = vadd.f32 %v846_v25, %v4230_v9  ;;  %v847_v19 = vmul.f32 %v712_v45, %v712_v45  ;;  %v1259_v40 = vmul.f32 %v2076_v38, %v3873_v15 }
 0x1c0   :  { %v1240_v47 = vsel %vm1239_vm14, %v3849_v58, %v1238_v24  ;;  %vm1260_vm0 = vcmp.eq.f32.partialorder %v3873_v15, inf  ;;  %vm1262_vm1 = vcmp.eq.f32.partialorder %v3873_v15, 0.0  ;;  %v1263_v0 = vand.u32 2147483648, %v3873_v15  ;;  %v720_v60 = vpop.f32.mrf.mxu1 }
 0x1c1   :  { %v1243_v30 = vsel %vm1241_vm15, %v1242_v62, %v1240_v47  ;;  %v2084_v14 = vpop.eup %2083  ;;  %2093 = vrsqrt.f32 %v3973_v31  ;;  %v3982_v48 = vadd.f32 %v847_v19, %v4231_v28  ;;  %v1261_v58 = vsel %vm1260_vm0, %v3873_v15, %v1259_v40 }
 0x1c2   :  { %1575 = vmatmul.mubr.f32.gmra.mxu0 %v1243_v30  ;;  %v848_v21 = vmul.f32 %v714_v11, %v714_v11  ;;  %2095 = vrsqrt.f32 %v3964_v26  ;;  %v1264_v57 = vsel %vm1262_vm1, %v1263_v0, %v1261_v58  ;;  %v1252_v10 = vmul.f32 %v3932_v27, %v3865_v43 }
 0x1c3   :  { %vm1253_vm2 = vcmp.eq.f32.partialorder %v3865_v43, inf  ;;  %1579 = vmatprep.mubr.f32.mxu0 %v1264_v57  ;;  %vm1255_vm3 = vcmp.eq.f32.partialorder %v3865_v43, 0.0  ;;  %v1256_v29 = vand.u32 2147483648, %v3865_v43  ;;  %v849_v1 = vmul.f32 %v718_v46, %v718_v46 }
 0x1c4   :  { %v3990_v33 = vadd.f32 %v848_v21, %v4232_v41  ;;  %v2086_v15 = vpop.eup %2085  ;;  %2097 = vrsqrt.f32 %v3982_v48  ;;  %v1254_v52 = vsel %vm1253_vm2, %v3865_v43, %v1252_v10  ;;  %v1273_v59 = vmul.f32 %v2080_v23, %v3895_v35 }
 0x1c5   :  { %vm1274_vm4 = vcmp.eq.f32.partialorder %v3895_v35, inf  ;;  %v1257_v27 = vsel %vm1255_vm3, %v1256_v29, %v1254_v52  ;;  %v4000_v54 = vadd.f32 %v849_v1, %v4233_v61  ;;  %v1277_v44 = vand.u32 2147483648, %v3895_v35 }
 0x1c6   :  { %2099 = vrsqrt.f32 %v3990_v33  ;;  %v2088_v36 = vpop.eup %2087  ;;  %1580 = vmatmul.mubr.f32.gmra.mxu0 %v1257_v27  ;;  %v1275_v7 = vsel %vm1274_vm4, %v3895_v35, %v1273_v59  ;;  %vm1276_vm5 = vcmp.eq.f32.partialorder %v3895_v35, 0.0  ;;  %v850_v38 = vmul.f32 %v720_v60, %v720_v60 }
 0x1c7   :  { %v1266_v43 = vmul.f32 %v2078_v55, %v3882_v4  ;;  %2101 = vrsqrt.f32 %v4000_v54  ;;  %v1278_v2 = vsel %vm1276_vm5, %v1277_v44, %v1275_v7  ;;  %vm1267_vm6 = vcmp.eq.f32.partialorder %v3882_v4, inf }
 0x1c8   :  { %v1270_v5 = vand.u32 2147483648, %v3882_v4  ;;  %v2090_v37 = vpop.eup %2089  ;;  %1584 = vmatprep.mubr.f32.mxu0 %v1278_v2  ;;  %v4010_v49 = vadd.f32 %v850_v38, %v4234_v8  ;;  %vm1269_vm7 = vcmp.eq.f32.partialorder %v3882_v4, 0.0  ;;  %v1287_v35 = vmul.f32 %v2084_v14, %v3911_v53 }
 0x1c9   :  { %v1268_v42 = vsel %vm1267_vm6, %v3882_v4, %v1266_v43  ;;  %vm1288_vm8 = vcmp.eq.f32.partialorder %v3911_v53, inf  ;;  %v1291_v51 = vand.u32 2147483648, %v3911_v53  ;;  %v1280_v55 = vmul.f32 %v2082_v12, %v3903_v39 }
 0x1ca   :  { %v2092_v32 = vpop.eup %2091  ;;  %v1271_v50 = vsel %vm1269_vm7, %v1270_v5, %v1268_v42  ;;  %2103 = vrsqrt.f32 %v4010_v49  ;;  %v1289_v16 = vsel %vm1288_vm8, %v3911_v53, %v1287_v35  ;;  %vm1290_vm9 = vcmp.eq.f32.partialorder %v3911_v53, 0.0 }
 0x1cb   :  { %1585 = vmatmul.mubr.f32.gmra.mxu0 %v1271_v50  ;;  %vm1281_vm10 = vcmp.eq.f32.partialorder %v3903_v39, inf  ;;  %v1292_v4 = vsel %vm1290_vm9, %v1291_v51, %v1289_v16  ;;  %v1284_v45 = vand.u32 2147483648, %v3903_v39  ;;  %v1301_v63 = vmul.f32 %v2088_v36, %v3935_v20 }
 0x1cc   :  { %v1282_v6 = vsel %vm1281_vm10, %v3903_v39, %v1280_v55  ;;  %1589 = vmatprep.mubr.f32.mxu0 %v1292_v4  ;;  %vm1283_vm11 = vcmp.eq.f32.partialorder %v3903_v39, 0.0  ;;  %vm1302_vm12 = vcmp.eq.f32.partialorder %v3935_v20, inf  ;;  %v1305_v13 = vand.u32 2147483648, %v3935_v20 }
 0x1cd   :  { %v1294_v23 = vmul.f32 %v2086_v15, %v3922_v3  ;;  %v1285_v22 = vsel %vm1283_vm11, %v1284_v45, %v1282_v6  ;;  %v1303_v53 = vsel %vm1302_vm12, %v3935_v20, %v1301_v63  ;;  %vm1304_vm13 = vcmp.eq.f32.partialorder %v3935_v20, 0.0 }
 0x1ce   :  { %vm1295_vm14 = vcmp.eq.f32.partialorder %v3922_v3, inf  ;;  %v2094_v56 = vpop.eup %2093  ;;  %v1306_v25 = vsel %vm1304_vm13, %v1305_v13, %v1303_v53  ;;  %v1315_v39 = vmul.f32 %v2092_v32, %v3952_v18  ;;  %v1298_v34 = vand.u32 2147483648, %v3922_v3 }
 0x1cf   :  { %1590 = vmatmul.mubr.f32.gmra.mxu0 %v1285_v22  ;;  %v1296_v24 = vsel %vm1295_vm14, %v3922_v3, %v1294_v23  ;;  %v2096_v11 = vpop.eup %2095  ;;  %vm1316_vm15 = vcmp.eq.f32.partialorder %v3952_v18, inf  ;;  %v1319_v62 = vand.u32 2147483648, %v3952_v18  ;;  %v1308_v12 = vmul.f32 %v2090_v37, %v3943_v17 }
 0x1d0   :  { %1594 = vmatprep.mubr.f32.mxu0 %v1306_v25  ;;  %vm1297_vm0 = vcmp.eq.f32.partialorder %v3922_v3, 0.0  ;;  %v1317_v20 = vsel %vm1316_vm15, %v3952_v18, %v1315_v39  ;;  %vm1318_vm1 = vcmp.eq.f32.partialorder %v3952_v18, 0.0  ;;  %vm1309_vm2 = vcmp.eq.f32.partialorder %v3943_v17, inf }
 0x1d1   :  { %v2098_v9 = vpop.eup %2097  ;;  %v1299_v47 = vsel %vm1297_vm0, %v1298_v34, %v1296_v24  ;;  %v1320_v19 = vsel %vm1318_vm1, %v1319_v62, %v1317_v20  ;;  %v1329_v40 = vmul.f32 %v2094_v56, %v3973_v31  ;;  %v1310_v30 = vsel %vm1309_vm2, %v3943_v17, %v1308_v12 }
 0x1d2   :  { %vm1330_vm3 = vcmp.eq.f32.partialorder %v3973_v31, inf  ;;  %v1333_v0 = vand.u32 2147483648, %v3973_v31  ;;  %v1322_v3 = vmul.f32 %v2096_v11, %v3964_v26  ;;  %v1312_v18 = vand.u32 2147483648, %v3943_v17 }
 0x1d3   :  { %v2100_v46 = vpop.eup %2099  ;;  %1595 = vmatmul.mubr.f32.gmra.mxu0 %v1299_v47  ;;  %v1331_v14 = vsel %vm1330_vm3, %v3973_v31, %v1329_v40  ;;  %vm1332_vm4 = vcmp.eq.f32.partialorder %v3973_v31, 0.0  ;;  %vm1311_vm5 = vcmp.eq.f32.partialorder %v3943_v17, 0.0  ;;  %vm1323_vm6 = vcmp.eq.f32.partialorder %v3964_v26, inf }
 0x1d4   :  { %1599 = vmatprep.mubr.f32.mxu0 %v1320_v19  ;;  %v2102_v28 = vpop.eup %2101  ;;  %v1334_v58 = vsel %vm1332_vm4, %v1333_v0, %v1331_v14  ;;  %v1343_v21 = vmul.f32 %v2100_v46, %v3990_v33  ;;  %v1313_v57 = vsel %vm1311_vm5, %v1312_v18, %v1310_v30  ;;  %vm1344_vm7 = vcmp.eq.f32.partialorder %v3990_v33, inf }
 0x1d5   :  { %v1324_v10 = vsel %vm1323_vm6, %v3964_v26, %v1322_v3  ;;  %v1347_v29 = vand.u32 2147483648, %v3990_v33  ;;  %v1336_v31 = vmul.f32 %v2098_v9, %v3982_v48  ;;  %v1326_v17 = vand.u32 2147483648, %v3964_v26 }
 0x1d6   :  { %v1345_v41 = vsel %vm1344_vm7, %v3990_v33, %v1343_v21  ;;  %vm1346_vm8 = vcmp.eq.f32.partialorder %v3990_v33, 0.0  ;;  %vm1325_vm9 = vcmp.eq.f32.partialorder %v3964_v26, 0.0  ;;  %vm1337_vm10 = vcmp.eq.f32.partialorder %v3982_v48, inf }
 0x1d7   :  { %1600 = vmatmul.mubr.f32.gmra.mxu0 %v1313_v57  ;;  %v2104_v1 = vpop.eup %2103  ;;  %v1348_v60 = vsel %vm1346_vm8, %v1347_v29, %v1345_v41  ;;  %v1327_v52 = vsel %vm1325_vm9, %v1326_v17, %v1324_v10  ;;  %vm1358_vm11 = vcmp.eq.f32.partialorder %v4010_v49, inf  ;;  %v1338_v59 = vsel %vm1337_vm10, %v3982_v48, %v1336_v31 }
 0x1d8   :  { %1604 = vmatprep.mubr.f32.mxu0 %v1334_v58  ;;  %v1357_v15 = vmul.f32 %v2104_v1, %v4010_v49  ;;  %v1361_v61 = vand.u32 2147483648, %v4010_v49  ;;  %v1350_v44 = vmul.f32 %v2102_v28, %v4000_v54  ;;  %v1340_v26 = vand.u32 2147483648, %v3982_v48 }
 0x1d9   :  { %vm1360_vm12 = vcmp.eq.f32.partialorder %v4010_v49, 0.0  ;;  %vm1339_vm13 = vcmp.eq.f32.partialorder %v3982_v48, 0.0  ;;  %vm1351_vm14 = vcmp.eq.f32.partialorder %v4000_v54, inf  ;;  %v1354_v38 = vand.u32 2147483648, %v4000_v54 }
 0x1da   :  { %v1359_v27 = vsel %vm1358_vm11, %v4010_v49, %v1357_v15  ;;  %v1341_v36 = vsel %vm1339_vm13, %v1340_v26, %v1338_v59  ;;  %v1352_v7 = vsel %vm1351_vm14, %v4000_v54, %v1350_v44  ;;  %vm1353_vm15 = vcmp.eq.f32.partialorder %v4000_v54, 0.0 }
 0x1db   :  { %1605 = vmatmul.mubr.f32.gmra.mxu0 %v1327_v52  ;;  %v1362_v33 = vsel %vm1360_vm12, %v1361_v61, %v1359_v27  ;;  %v1355_v43 = vsel %vm1353_vm15, %v1354_v38, %v1352_v7 }
 0x1dc   :  { %1609 = vmatprep.mubr.f32.mxu0 %v1348_v60 }
 0x1df   :  { %1610 = vmatmul.mubr.f32.gmra.mxu0 %v1341_v36 }
 0x1e0   :  { %1614 = vmatprep.mubr.f32.mxu0 %v1362_v33 }
 0x1e3   :  { %1615 = vmatmul.mubr.f32.gmra.mxu0 %v1355_v43 }
 0x21c   :  { %v1461_v2 = vpop.f32.mrf.mxu0 }
 0x21d   :  { %v1620_v5 = vmax.f32 %v1461_v2, 1e-05 }
 0x21e   :  { %v1463_v37 = vpop.f32.mrf.mxu0 }
 0x21f   :  { %2105 = vlog2.f32 %v1620_v5 }
 0x220   :  { %v1466_v8 = vpop.f32.mrf.mxu0 }
 0x221   :  { %v1621_v48 = vmax.f32 %v1466_v8, 1e-05 }
 0x222   :  { %v1468_v49 = vpop.f32.mrf.mxu0 }
 0x223   :  { %2107 = vlog2.f32 %v1621_v48 }
 0x224   :  { %v1471_v42 = vpop.f32.mrf.mxu0 }
 0x225   :  { %v1622_v35 = vmax.f32 %v1471_v42, 1e-05 }
 0x226   :  { %v1473_v32 = vpop.f32.mrf.mxu0 }
 0x227   :  { %2109 = vlog2.f32 %v1622_v35 }
 0x228   :  { %v1476_v50 = vpop.f32.mrf.mxu0 }
 0x229   :  { %v1623_v51 = vmax.f32 %v1476_v50, 1e-05 }
 0x22a   :  { %v1478_v55 = vpop.f32.mrf.mxu0 }
 0x22b   :  { %2111 = vlog2.f32 %v1623_v51 }
 0x22c   :  { %v2106_v16 = vpop.eup %2105 }
 0x22d   :  { %v1481_v54 = vpop.f32.mrf.mxu0  ;;  %v1653_v4 = vmul.f32 0.6931472, %v2106_v16 }
 0x22e   :  { %v1624_v6 = vmax.f32 %v1481_v54, 1e-05 }
 0x22f   :  { %v1483_v45 = vpop.f32.mrf.mxu0  ;;  %v1716_v63 = vmul.f32 0.6948712, %v1653_v4 }
 0x230   :  { %2113 = vlog2.f32 %v1624_v6  ;;  %v2108_v13 = vpop.eup %2107 }
 0x231   :  { %v1486_v23 = vpop.f32.mrf.mxu0  ;;  %v1748_v22 = vadd.f32 2.4, %v1716_v63  ;;  %v1655_v53 = vmul.f32 0.6931472, %v2108_v13 }
 0x232   :  { %v1625_v56 = vmax.f32 %v1486_v23, 1e-05 }
 0x233   :  { %v1488_v25 = vpop.f32.mrf.mxu0  ;;  %v1880_v24 = vclamps-f32 %v1748_v22, 4.0  ;;  %v1717_v39 = vmul.f32 0.6948712, %v1655_v53 }
 0x234   :  { %2115 = vlog2.f32 %v1625_v56  ;;  %v2110_v11 = vpop.eup %2109 }
 0x235   :  { %v1491_v34 = vpop.f32.mrf.mxu0  ;;  %1844 = vst [vmem:[%s4175_s4] sm:$0xff] %v1880_v24  ;;  %v1749_v62 = vadd.f32 2.4, %v1717_v39  ;;  %v1657_v12 = vmul.f32 0.6931472, %v2110_v11 }
 0x236   :  { %v1626_v20 = vmax.f32 %v1491_v34, 1e-05 }
 0x237   :  { %v1493_v9 = vpop.f32.mrf.mxu0  ;;  %v1881_v47 = vclamps-f32 %v1749_v62, 4.0  ;;  %v1718_v19 = vmul.f32 0.6948712, %v1657_v12 }
 0x238   :  { %2117 = vlog2.f32 %v1626_v20  ;;  %v2112_v40 = vpop.eup %2111 }
 0x239   :  { %1845 = vst [vmem:[%s4175_s4 + $0x8] sm:$0xff] %v1881_v47  ;;  %v1750_v30 = vadd.f32 2.4, %v1718_v19  ;;  %v1659_v0 = vmul.f32 0.6931472, %v2112_v40 }
 0x23a   :  { %v1496_v46 = vpop.f32.mrf.mxu0 }
 0x23b   :  { %v1627_v3 = vmax.f32 %v1496_v46, 1e-05  ;;  %v1882_v14 = vclamps-f32 %v1750_v30, 4.0  ;;  %v1719_v28 = vmul.f32 0.6948712, %v1659_v0 }
 0x23c   :  { %v1498_v18 = vpop.f32.mrf.mxu0 }
 0x23d   :  { %2119 = vlog2.f32 %v1627_v3  ;;  %v2114_v58 = vpop.eup %2113  ;;  %1846 = vst [vmem:[%s4175_s4 + $0x10] sm:$0xff] %v1882_v14  ;;  %v1751_v57 = vadd.f32 2.4, %v1719_v28 }
 0x23e   :  { %v1501_v21 = vpop.f32.mrf.mxu0  ;;  %v1661_v10 = vmul.f32 0.6931472, %v2114_v58 }
 0x23f   :  { %v1628_v41 = vmax.f32 %v1501_v21, 1e-05  ;;  %v1883_v31 = vclamps-f32 %v1751_v57, 4.0 }
 0x240   :  { %v1503_v29 = vpop.f32.mrf.mxu0  ;;  %v1720_v1 = vmul.f32 0.6948712, %v1661_v10 }
 0x241   :  { %2121 = vlog2.f32 %v1628_v41  ;;  %v2116_v17 = vpop.eup %2115  ;;  %1847 = vst [vmem:[%s4175_s4 + $0x18] sm:$0xff] %v1883_v31 }
 0x242   :  { %v1506_v60 = vpop.f32.mrf.mxu0  ;;  %v1752_v15 = vadd.f32 2.4, %v1720_v1  ;;  %v1663_v52 = vmul.f32 0.6931472, %v2116_v17 }
 0x243   :  { %v1629_v59 = vmax.f32 %v1506_v60, 1e-05 }
 0x244   :  { %v1508_v27 = vpop.f32.mrf.mxu0  ;;  %v1884_v61 = vclamps-f32 %v1752_v15, 4.0  ;;  %v1721_v44 = vmul.f32 0.6948712, %v1663_v52 }
 0x245   :  { %2123 = vlog2.f32 %v1629_v59  ;;  %v2118_v26 = vpop.eup %2117 }
 0x246   :  { %v1511_v33 = vpop.f32.mrf.mxu0  ;;  %1848 = vst [vmem:[%s4175_s4 + $0x20] sm:$0xff] %v1884_v61  ;;  %v1753_v36 = vadd.f32 2.4, %v1721_v44  ;;  %v1665_v7 = vmul.f32 0.6931472, %v2118_v26 }
 0x247   :  { %v1630_v38 = vmax.f32 %v1511_v33, 1e-05 }
 0x248   :  { %v1513_v43 = vpop.f32.mrf.mxu0  ;;  %v1885_v2 = vclamps-f32 %v1753_v36, 4.0  ;;  %v1722_v5 = vmul.f32 0.6948712, %v1665_v7 }
 0x249   :  { %2125 = vlog2.f32 %v1630_v38 }
 0x24a   :  { %v2120_v37 = vpop.eup %2119  ;;  %v1516_v8 = vpop.f32.mrf.mxu0  ;;  %1849 = vst [vmem:[%s4175_s4 + $0x28] sm:$0xff] %v1885_v2  ;;  %v1754_v48 = vadd.f32 2.4, %v1722_v5 }
 0x24b   :  { %v1667_v49 = vmul.f32 0.6931472, %v2120_v37  ;;  %v1631_v42 = vmax.f32 %v1516_v8, 1e-05 }
 0x24c   :  { %v1518_v35 = vpop.f32.mrf.mxu0  ;;  %v1886_v32 = vclamps-f32 %v1754_v48, 4.0 }
 0x24d   :  { %v1723_v50 = vmul.f32 0.6948712, %v1667_v49  ;;  %2127 = vlog2.f32 %v1631_v42 }
 0x24e   :  { %v2122_v51 = vpop.eup %2121  ;;  %1850 = vst [vmem:[%s4175_s4 + $0x30] sm:$0xff] %v1886_v32  ;;  %v1521_v54 = vpop.f32.mrf.mxu0 }
 0x24f   :  { %v1755_v55 = vadd.f32 2.4, %v1723_v50  ;;  %v1669_v16 = vmul.f32 0.6931472, %v2122_v51  ;;  %v1632_v4 = vmax.f32 %v1521_v54, 1e-05 }
 0x250   :  { %v1523_v63 = vpop.f32.mrf.mxu0 }
 0x251   :  { %v1887_v6 = vclamps-f32 %v1755_v55, 4.0  ;;  %v1724_v45 = vmul.f32 0.6948712, %v1669_v16  ;;  %2129 = vlog2.f32 %v1632_v4 }
 0x252   :  { %v2124_v13 = vpop.eup %2123 }
 0x253   :  { %1851 = vst [vmem:[%s4175_s4 + $0x38] sm:$0xff] %v1887_v6  ;;  %v1756_v23 = vadd.f32 2.4, %v1724_v45  ;;  %v1671_v22 = vmul.f32 0.6931472, %v2124_v13 }
 0x254   :  { %v1526_v53 = vpop.f32.mrf.mxu0 }
 0x255   :  { %v1888_v56 = vclamps-f32 %v1756_v23, 4.0  ;;  %v1725_v25 = vmul.f32 0.6948712, %v1671_v22  ;;  %v1633_v24 = vmax.f32 %v1526_v53, 1e-05 }
 0x256   :  { %v2126_v39 = vpop.eup %2125  ;;  %v1528_v11 = vpop.f32.mrf.mxu0 }
 0x257   :  { %1852 = vst [vmem:[%s4175_s4 + $0x40] sm:$0xff] %v1888_v56  ;;  %v1757_v34 = vadd.f32 2.4, %v1725_v25  ;;  %v1673_v62 = vmul.f32 0.6931472, %v2126_v39  ;;  %2131 = vlog2.f32 %v1633_v24 }
 0x258   :  { %v1531_v9 = vpop.f32.mrf.mxu0 }
 0x259   :  { %v1889_v12 = vclamps-f32 %v1757_v34, 4.0  ;;  %v1726_v20 = vmul.f32 0.6948712, %v1673_v62  ;;  %v1634_v19 = vmax.f32 %v1531_v9, 1e-05 }
 0x25a   :  { %v2128_v47 = vpop.eup %2127  ;;  %v1533_v30 = vpop.f32.mrf.mxu0 }
 0x25b   :  { %1853 = vst [vmem:[%s4175_s4 + $0x48] sm:$0xff] %v1889_v12  ;;  %v1758_v40 = vadd.f32 2.4, %v1726_v20  ;;  %v1675_v46 = vmul.f32 0.6931472, %v2128_v47  ;;  %2133 = vlog2.f32 %v1634_v19 }
 0x25d   :  { %v1890_v0 = vclamps-f32 %v1758_v40, 4.0  ;;  %v1727_v3 = vmul.f32 0.6948712, %v1675_v46  ;;  %v1536_v18 = vpop.f32.mrf.mxu0 }
 0x25e   :  { %v1635_v14 = vmax.f32 %v1536_v18, 1e-05  ;;  %v2130_v28 = vpop.eup %2129 }
 0x25f   :  { %1854 = vst [vmem:[%s4175_s4 + $0x50] sm:$0xff] %v1890_v0  ;;  %v1759_v58 = vadd.f32 2.4, %v1727_v3  ;;  %v1538_v21 = vpop.f32.mrf.mxu0  ;;  %v1677_v57 = vmul.f32 0.6931472, %v2130_v28 }
 0x260   :  { %2135 = vlog2.f32 %v1635_v14 }
 0x261   :  { %v1891_v10 = vclamps-f32 %v1759_v58, 4.0  ;;  %v1728_v41 = vmul.f32 0.6948712, %v1677_v57 }
 0x262   :  { %v1541_v29 = vpop.f32.mrf.mxu0 }
 0x263   :  { %1855 = vst [vmem:[%s4175_s4 + $0x58] sm:$0xff] %v1891_v10  ;;  %v1760_v1 = vadd.f32 2.4, %v1728_v41  ;;  %v1636_v17 = vmax.f32 %v1541_v29, 1e-05 }
 0x264   :  { %v2132_v31 = vpop.eup %2131  ;;  %v1543_v15 = vpop.f32.mrf.mxu0 }
 0x265   :  { %v1679_v60 = vmul.f32 0.6931472, %v2132_v31  ;;  %v1892_v52 = vclamps-f32 %v1760_v1, 4.0  ;;  %2137 = vlog2.f32 %v1636_v17 }
 0x266   :  { %v1546_v27 = vpop.f32.mrf.mxu0 }
 0x267   :  { %v1729_v59 = vmul.f32 0.6948712, %v1679_v60  ;;  %1856 = vst [vmem:[%s4175_s4 + $0x60] sm:$0xff] %v1892_v52  ;;  %v1637_v61 = vmax.f32 %v1546_v27, 1e-05 }
 0x268   :  { %v2134_v44 = vpop.eup %2133  ;;  %v1548_v33 = vpop.f32.mrf.mxu0 }
 0x269   :  { %v1761_v26 = vadd.f32 2.4, %v1729_v59  ;;  %v1681_v36 = vmul.f32 0.6931472, %v2134_v44  ;;  %2139 = vlog2.f32 %v1637_v61 }
 0x26b   :  { %v1893_v7 = vclamps-f32 %v1761_v26, 4.0  ;;  %v1730_v38 = vmul.f32 0.6948712, %v1681_v36  ;;  %v1551_v43 = vpop.f32.mrf.mxu0 }
 0x26c   :  { %v1638_v5 = vmax.f32 %v1551_v43, 1e-05 }
 0x26d   :  { %v2136_v2 = vpop.eup %2135  ;;  %1857 = vst [vmem:[%s4175_s4 + $0x68] sm:$0xff] %v1893_v7  ;;  %v1762_v37 = vadd.f32 2.4, %v1730_v38  ;;  %v1553_v48 = vpop.f32.mrf.mxu0 }
 0x26e   :  { %v1683_v8 = vmul.f32 0.6931472, %v2136_v2  ;;  %2141 = vlog2.f32 %v1638_v5 }
 0x26f   :  { %v1894_v49 = vclamps-f32 %v1762_v37, 4.0 }
 0x270   :  { %v1731_v42 = vmul.f32 0.6948712, %v1683_v8  ;;  %v1556_v35 = vpop.f32.mrf.mxu0 }
 0x271   :  { %v1639_v32 = vmax.f32 %v1556_v35, 1e-05  ;;  %1858 = vst [vmem:[%s4175_s4 + $0x70] sm:$0xff] %v1894_v49 }
 0x272   :  { %v1763_v50 = vadd.f32 2.4, %v1731_v42  ;;  %v1558_v51 = vpop.f32.mrf.mxu0  ;;  %v2138_v55 = vpop.eup %2137 }
 0x273   :  { %2143 = vlog2.f32 %v1639_v32  ;;  %v1685_v54 = vmul.f32 0.6931472, %v2138_v55 }
 0x274   :  { %v1895_v16 = vclamps-f32 %v1763_v50, 4.0  ;;  %v1561_v4 = vpop.f32.mrf.mxu0 }
 0x275   :  { %v1732_v6 = vmul.f32 0.6948712, %v1685_v54  ;;  %v1640_v45 = vmax.f32 %v1561_v4, 1e-05 }
 0x276   :  { %1859 = vst [vmem:[%s4175_s4 + $0x78] sm:$0xff] %v1895_v16  ;;  %v2140_v63 = vpop.eup %2139  ;;  %v1563_v13 = vpop.f32.mrf.mxu0 }
 0x277   :  { %v1764_v23 = vadd.f32 2.4, %v1732_v6  ;;  %v1687_v22 = vmul.f32 0.6931472, %v2140_v63  ;;  %2145 = vlog2.f32 %v1640_v45 }
 0x279   :  { %v1566_v53 = vpop.f32.mrf.mxu0  ;;  %v1896_v56 = vclamps-f32 %v1764_v23, 4.0  ;;  %v1733_v25 = vmul.f32 0.6948712, %v1687_v22 }
 0x27a   :  { %v1641_v24 = vmax.f32 %v1566_v53, 1e-05 }
 0x27b   :  { %v1568_v39 = vpop.f32.mrf.mxu0  ;;  %v2142_v11 = vpop.eup %2141  ;;  %1860 = vst [vmem:[%s4175_s4 + $0x80] sm:$0xff] %v1896_v56  ;;  %v1765_v34 = vadd.f32 2.4, %v1733_v25 }
 0x27c   :  { %2147 = vlog2.f32 %v1641_v24  ;;  %v1689_v62 = vmul.f32 0.6931472, %v2142_v11 }
 0x27d   :  { %v1897_v12 = vclamps-f32 %v1765_v34, 4.0  ;;  %v1571_v20 = vpop.f32.mrf.mxu0 }
 0x27e   :  { %v1734_v9 = vmul.f32 0.6948712, %v1689_v62  ;;  %v1642_v47 = vmax.f32 %v1571_v20, 1e-05 }
 0x27f   :  { %1861 = vst [vmem:[%s4175_s4 + $0x88] sm:$0xff] %v1897_v12  ;;  %v1573_v40 = vpop.f32.mrf.mxu0 }
 0x280   :  { %v2144_v19 = vpop.eup %2143  ;;  %v1766_v46 = vadd.f32 2.4, %v1734_v9  ;;  %2149 = vlog2.f32 %v1642_v47 }
 0x281   :  { %v1691_v30 = vmul.f32 0.6931472, %v2144_v19 }
 0x282   :  { %v1576_v0 = vpop.f32.mrf.mxu0  ;;  %v1898_v3 = vclamps-f32 %v1766_v46, 4.0 }
 0x283   :  { %v1735_v18 = vmul.f32 0.6948712, %v1691_v30  ;;  %v1643_v14 = vmax.f32 %v1576_v0, 1e-05 }
 0x284   :  { %v1578_v28 = vpop.f32.mrf.mxu0  ;;  %v2146_v58 = vpop.eup %2145  ;;  %1862 = vst [vmem:[%s4175_s4 + $0x90] sm:$0xff] %v1898_v3 }
 0x285   :  { %v1767_v21 = vadd.f32 2.4, %v1735_v18  ;;  %2151 = vlog2.f32 %v1643_v14  ;;  %v1693_v57 = vmul.f32 0.6931472, %v2146_v58 }
 0x286   :  { %v1581_v41 = vpop.f32.mrf.mxu0 }
 0x287   :  { %v1899_v10 = vclamps-f32 %v1767_v21, 4.0  ;;  %v1736_v29 = vmul.f32 0.6948712, %v1693_v57  ;;  %v1644_v31 = vmax.f32 %v1581_v41, 1e-05 }
 0x288   :  { %v1583_v17 = vpop.f32.mrf.mxu0 }
 0x289   :  { %v2148_v1 = vpop.eup %2147  ;;  %1863 = vst [vmem:[%s4175_s4 + $0x98] sm:$0xff] %v1899_v10  ;;  %v1768_v60 = vadd.f32 2.4, %v1736_v29  ;;  %2153 = vlog2.f32 %v1644_v31 }
 0x28a   :  { %v1695_v15 = vmul.f32 0.6931472, %v2148_v1 }
 0x28b   :  { %v1586_v52 = vpop.f32.mrf.mxu0  ;;  %v1900_v59 = vclamps-f32 %v1768_v60, 4.0 }
 0x28c   :  { %v1737_v27 = vmul.f32 0.6948712, %v1695_v15  ;;  %v1645_v61 = vmax.f32 %v1586_v52, 1e-05 }
 0x28d   :  { %v1588_v44 = vpop.f32.mrf.mxu0  ;;  %v2150_v26 = vpop.eup %2149  ;;  %1864 = vst [vmem:[%s4175_s4 + $0xa0] sm:$0xff] %v1900_v59 }
 0x28e   :  { %v1769_v33 = vadd.f32 2.4, %v1737_v27  ;;  %2155 = vlog2.f32 %v1645_v61  ;;  %v1697_v36 = vmul.f32 0.6931472, %v2150_v26 }
 0x28f   :  { %v1591_v7 = vpop.f32.mrf.mxu0 }
 0x290   :  { %v1901_v38 = vclamps-f32 %v1769_v33, 4.0  ;;  %v1646_v43 = vmax.f32 %v1591_v7, 1e-05  ;;  %v1738_v2 = vmul.f32 0.6948712, %v1697_v36 }
 0x291   :  { %v1593_v5 = vpop.f32.mrf.mxu0 }
 0x292   :  { %v2152_v37 = vpop.eup %2151  ;;  %1865 = vst [vmem:[%s4175_s4 + $0xa8] sm:$0xff] %v1901_v38  ;;  %2157 = vlog2.f32 %v1646_v43  ;;  %v1770_v8 = vadd.f32 2.4, %v1738_v2 }
 0x293   :  { %v1699_v48 = vmul.f32 0.6931472, %v2152_v37  ;;  %v1596_v49 = vpop.f32.mrf.mxu0 }
 0x294   :  { %v1647_v42 = vmax.f32 %v1596_v49, 1e-05  ;;  %v1902_v35 = vclamps-f32 %v1770_v8, 4.0 }
 0x295   :  { %v1739_v32 = vmul.f32 0.6948712, %v1699_v48  ;;  %v1598_v50 = vpop.f32.mrf.mxu0 }
 0x296   :  { %2159 = vlog2.f32 %v1647_v42  ;;  %v2154_v51 = vpop.eup %2153  ;;  %1866 = vst [vmem:[%s4175_s4 + $0xb0] sm:$0xff] %v1902_v35 }
 0x297   :  { %v1771_v55 = vadd.f32 2.4, %v1739_v32  ;;  %v1601_v16 = vpop.f32.mrf.mxu0  ;;  %v1701_v54 = vmul.f32 0.6931472, %v2154_v51 }
 0x298   :  { %v1648_v4 = vmax.f32 %v1601_v16, 1e-05 }
 0x299   :  { %v1903_v6 = vclamps-f32 %v1771_v55, 4.0  ;;  %v1603_v45 = vpop.f32.mrf.mxu0  ;;  %v1740_v63 = vmul.f32 0.6948712, %v1701_v54 }
 0x29a   :  { %2161 = vlog2.f32 %v1648_v4 }
 0x29b   :  { %v2156_v13 = vpop.eup %2155  ;;  %1867 = vst [vmem:[%s4175_s4 + $0xb8] sm:$0xff] %v1903_v6  ;;  %v1606_v23 = vpop.f32.mrf.mxu0  ;;  %v1772_v22 = vadd.f32 2.4, %v1740_v63 }
 0x29c   :  { %v1703_v53 = vmul.f32 0.6931472, %v2156_v13  ;;  %v1649_v56 = vmax.f32 %v1606_v23, 1e-05 }
 0x29d   :  { %v1608_v25 = vpop.f32.mrf.mxu0  ;;  %v1904_v24 = vclamps-f32 %v1772_v22, 4.0 }
 0x29e   :  { %v1741_v39 = vmul.f32 0.6948712, %v1703_v53  ;;  %2163 = vlog2.f32 %v1649_v56 }
 0x29f   :  { %v2158_v11 = vpop.eup %2157  ;;  %v1611_v34 = vpop.f32.mrf.mxu0  ;;  %1868 = vst [vmem:[%s4175_s4 + $0xc0] sm:$0xff] %v1904_v24 }
 0x2a0   :  { %v1773_v62 = vadd.f32 2.4, %v1741_v39  ;;  %v1705_v12 = vmul.f32 0.6931472, %v2158_v11  ;;  %v1650_v20 = vmax.f32 %v1611_v34, 1e-05 }
 0x2a1   :  { %v1613_v9 = vpop.f32.mrf.mxu0 }
 0x2a2   :  { %v1905_v47 = vclamps-f32 %v1773_v62, 4.0  ;;  %v1742_v19 = vmul.f32 0.6948712, %v1705_v12  ;;  %2165 = vlog2.f32 %v1650_v20 }
 0x2a3   :  { %v2160_v40 = vpop.eup %2159  ;;  %v1616_v46 = vpop.f32.mrf.mxu0 }
 0x2a4   :  { %1869 = vst [vmem:[%s4175_s4 + $0xc8] sm:$0xff] %v1905_v47  ;;  %v1774_v30 = vadd.f32 2.4, %v1742_v19  ;;  %v1707_v0 = vmul.f32 0.6931472, %v2160_v40 }
 0x2a5   :  { %v1651_v3 = vmax.f32 %v1616_v46, 1e-05  ;;  %v1618_v18 = vpop.f32.mrf.mxu0 }
 0x2a6   :  { %v1906_v14 = vclamps-f32 %v1774_v30, 4.0  ;;  %v1743_v28 = vmul.f32 0.6948712, %v1707_v0 }
 0x2a7   :  { %2167 = vlog2.f32 %v1651_v3  ;;  %v2162_v58 = vpop.eup %2161 }
 0x2a8   :  { %1870 = vst [vmem:[%s4175_s4 + $0xd0] sm:$0xff] %v1906_v14  ;;  %v1775_v21 = vadd.f32 2.4, %v1743_v28  ;;  %v1709_v57 = vmul.f32 0.6931472, %v2162_v58 }
 0x2aa   :  { %v1907_v10 = vclamps-f32 %v1775_v21, 4.0  ;;  %v1744_v41 = vmul.f32 0.6948712, %v1709_v57 }
 0x2ab   :  { %v2164_v29 = vpop.eup %2163 }
 0x2ac   :  { %1871 = vst [vmem:[%s4175_s4 + $0xd8] sm:$0xff] %v1907_v10  ;;  %v1776_v31 = vadd.f32 2.4, %v1744_v41  ;;  %v1711_v1 = vmul.f32 0.6931472, %v2164_v29 }
 0x2ae   :  { %v1908_v17 = vclamps-f32 %v1776_v31, 4.0  ;;  %v1745_v60 = vmul.f32 0.6948712, %v1711_v1 }
 0x2af   :  { %v2166_v15 = vpop.eup %2165 }
 0x2b0   :  { %1872 = vst [vmem:[%s4175_s4 + $0xe0] sm:$0xff] %v1908_v17  ;;  %v1777_v52 = vadd.f32 2.4, %v1745_v60  ;;  %v1713_v59 = vmul.f32 0.6931472, %v2166_v15 }
 0x2b2   :  { %v1909_v27 = vclamps-f32 %v1777_v52, 4.0  ;;  %v1746_v61 = vmul.f32 0.6948712, %v1713_v59 }
 0x2b4   :  { %v2168_v44 = vpop.eup %2167  ;;  %1873 = vst [vmem:[%s4175_s4 + $0xe8] sm:$0xff] %v1909_v27  ;;  %v1778_v26 = vadd.f32 2.4, %v1746_v61 }
 0x2b5   :  { %v1715_v33 = vmul.f32 0.6931472, %v2168_v44 }
 0x2b6   :  { %v1910_v36 = vclamps-f32 %v1778_v26, 4.0 }
 0x2b7   :  { %v1747_v7 = vmul.f32 0.6948712, %v1715_v33 }
 0x2b8   :  { %1874 = vst [vmem:[%s4175_s4 + $0xf0] sm:$0xff] %v1910_v36 }
 0x2b9   :  { %v1779_v38 = vadd.f32 2.4, %v1747_v7 }
 0x2bb   :  { %v1911_v43 = vclamps-f32 %v1779_v38, 4.0 }
 0x2bd   :  { %1875 = vst [vmem:[%s4175_s4 + $0xf8] sm:$0xff] %v1911_v43 }

</bundles_post_ra>
